<compile_context>
chip_gen: v6e
topology: v6e:2x2x1
jax: 0.10.0
libtpu: 0.0.40
codegen_flags: <defaults>
</compile_context>

<pallas_src>
import functools

import jax
import jax.numpy as jnp
from jax.experimental import pallas as pl
from jax.experimental.pallas import tpu as pltpu


def _log_sigmoid(x):
    # numerically stable log(sigmoid(x)) == min(x, 0) - log1p(exp(-|x|))
    return jnp.minimum(x, 0.0) - jnp.log1p(jnp.exp(-jnp.abs(x)))


def _default_config():
    """(tm_target, vmem_limit_bytes) tuned per chip generation (perf review)."""
    try:
        kind = jax.devices()[0].device_kind.lower()
    except Exception:
        kind = ""
    if any(t in kind for t in ("v4", "v5", "v6")):     # 128 MiB VMEM parts
        return 1024, 96 * 1024 * 1024
    return 512, 48 * 1024 * 1024                       # v7x (64 MiB) & safe default


def _resolve_tiling(m, tm, target):
    """Pick (tm, m_pad).  Never falls back to whole-M blocks for large M."""
    if tm is None:
        if m <= target:
            return m, m                                # full-extent block: always legal
        best = 0
        for d in range(8, target + 1, 8):              # largest mult-of-8 divisor <= target
            if m % d == 0:
                best = d
        if best >= max(8, target // 2):
            return best, m
        tm = target                                    # no good divisor -> pad + mask
    if tm >= m:
        return m, m
    tm = max(8, tm - tm % 8)
    m_pad = -(-m // tm) * tm
    return tm, m_pad


def _pass1_kernel(d0_ref, d1_ref, wp_ref, bp_ref, wm_ref, wmt_ref, bm_ref,
                  sim_ref, z0_ref, rowlse_ref, z1row_ref, collse_ref,
                  md1_ref, colm_ref, cols_ref,
                  *, precision, tm, m_valid, mask_rows):
    """Grid = (B, M//TM), mt axis 'arbitrary' (online column stats).
       d0: (TM,D)  d1: (N,D)  wp: (D,D scaled)  bp: (1,D scaled)  wm: (D,1)  wmT: (1,D)
       Outputs: sim (TM,N, out_dtype), z0 (TM,1), row_lse (TM,1),
                z1_row (1,N, written at mt==0), col_lse (1,N, written at last mt).
       Scratch: md1 (N,D), colm/cols (1,N) running column max / rescaled sum-exp."""
    mt = pl.program_id(1)

    @pl.when(mt == 0)
    def _init():
        d1 = d1_ref[...]
        md1_ref[...] = jnp.dot(d1, wp_ref[...], preferred_element_type=jnp.float32,
                               precision=precision) + bp_ref[...]
        # z1 as a lane-dense (1, N) row: contract the feature dim of wm^T and desc1.
        z1row_ref[...] = jax.lax.dot_general(
            wmt_ref[...], d1, dimension_numbers=(((1,), (1,)), ((), ())),
            preferred_element_type=jnp.float32, precision=precision) + bm_ref[...]
        colm_ref[...] = jnp.full(colm_ref.shape, -jnp.inf, jnp.float32)
        cols_ref[...] = jnp.zeros(cols_ref.shape, jnp.float32)

    d0 = d0_ref[...]
    md0 = jnp.dot(d0, wp_ref[...], preferred_element_type=jnp.float32,
                  precision=precision) + bp_ref[...]                          # (TM, D)
    sim = jax.lax.dot_general(md0, md1_ref[...],
                              dimension_numbers=(((1,), (1,)), ((), ())),
                              preferred_element_type=jnp.float32,
                              precision=precision)                            # (TM, N) f32
    sim_ref[...] = sim.astype(sim_ref.dtype)                                  # bf16 writeback
    z0_ref[...] = jnp.dot(d0, wm_ref[...], preferred_element_type=jnp.float32,
                          precision=precision) + bm_ref[...]                  # (TM, 1)

    # Row log-sum-exp while the f32 sim tile is resident (EUP work hidden under the
    # HBM-bound pipeline; pass 2 then needs no exp at all).
    row_max = jnp.max(sim, axis=1, keepdims=True)
    rowlse_ref[...] = row_max + jnp.log(
        jnp.sum(jnp.exp(sim - row_max), axis=1, keepdims=True))

    # Online (flash-style) column statistics across M tiles.
    if mask_rows:   # static: only compiled in when M was zero-padded to the tile size
        rows = jax.lax.broadcasted_iota(jnp.int32, sim.shape, 0) + mt * tm
        sim_c = jnp.where(rows < m_valid, sim, -jnp.inf)
    else:
        sim_c = sim
    m_old = colm_ref[...]
    m_new = jnp.maximum(m_old, jnp.max(sim_c, axis=0, keepdims=True))
    cols_ref[...] = (cols_ref[...] * jnp.exp(m_old - m_new)
                     + jnp.sum(jnp.exp(sim_c - m_new), axis=0, keepdims=True))
    colm_ref[...] = m_new

    @pl.when(mt == pl.num_programs(1) - 1)
    def _finish():
        collse_ref[...] = colm_ref[...] + jnp.log(cols_ref[...])


def _pass2_kernel(sim_ref, a_ref, c_ref, inner_ref):
    """Pure streaming pass, both grid axes 'parallel'.
       inner = (sim - row_lse) + (sim - col_lse) + logsig(z0) + logsig(z1)
             = 2*sim + a + c,  a = logsig(z0) - row_lse (TM,1), c = logsig(z1) - col_lse (1,N)."""
    s = sim_ref[...].astype(jnp.float32)
    inner_ref[...] = (s + s + a_ref[...] + c_ref[...]).astype(inner_ref.dtype)


def match_assignment(desc0, desc1, params, *, tm=None,
                     precision=jax.lax.Precision.DEFAULT,
                     out_dtype=jnp.bfloat16,
                     vmem_limit_bytes=None,
                     stitch=True):
    """Returns (scores, sim): scores (B, M+1, N+1), sim (B, M, N), both `out_dtype`.
       With stitch=False returns ((inner, last_col, last_row), sim) unstitched."""
    b, m, dim = desc0.shape
    _, n, _ = desc1.shape

    tm_target, vmem_default = _default_config()
    if vmem_limit_bytes is None:
        vmem_limit_bytes = vmem_default
    tm, m_pad = _resolve_tiling(m, tm, tm_target)
    n_mt = m_pad // tm
    mask_rows = m_pad != m

    # Fold the 1/dim**0.25 scaling of BOTH mdesc tensors into the projection
    # weights/bias (exact up to fp reassociation).  Matchability weights unscaled.
    scale = 1.0 / float(dim) ** 0.25
    wp = (params["wp"] * scale).astype(jnp.float32)
    bp = (params["bp"] * scale).astype(jnp.float32)
    wm = params["wm"].astype(jnp.float32)
    wmt = jnp.swapaxes(wm, 0, 1)                       # (1, D)
    bm = params["bm"].astype(jnp.float32)
    desc0 = desc0.astype(jnp.float32)
    desc1 = desc1.astype(jnp.float32)
    if mask_rows:
        desc0 = jnp.pad(desc0, ((0, 0), (0, m_pad - m), (0, 0)))

    cparams_p1 = pltpu.CompilerParams(
        dimension_semantics=("parallel", "arbitrary"),
        vmem_limit_bytes=vmem_limit_bytes)
    cparams_p2 = pltpu.CompilerParams(
        dimension_semantics=("parallel", "parallel"),
        vmem_limit_bytes=vmem_limit_bytes)

    # ---- pass 1: projections, sim, z0, row LSE, z1 row, column LSE ----
    sim, z0, row_lse, z1_row, col_lse = pl.pallas_call(
        functools.partial(_pass1_kernel, precision=precision, tm=tm,
                          m_valid=m, mask_rows=mask_rows),
        out_shape=(
            jax.ShapeDtypeStruct((b, m_pad, n), out_dtype),     # sim
            jax.ShapeDtypeStruct((b, m_pad, 1), jnp.float32),   # z0
            jax.ShapeDtypeStruct((b, m_pad, 1), jnp.float32),   # row logsumexp
            jax.ShapeDtypeStruct((b, 1, n), jnp.float32),       # z1 (row layout)
            jax.ShapeDtypeStruct((b, 1, n), jnp.float32),       # column logsumexp
        ),
        grid_spec=pltpu.PrefetchScalarGridSpec(
            num_scalar_prefetch=0,
            grid=(b, n_mt),
            in_specs=[
                pl.BlockSpec((None, tm, dim), lambda bi, mi: (bi, mi, 0)),   # desc0
                pl.BlockSpec((None, n, dim), lambda bi, mi: (bi, 0, 0)),     # desc1
                pl.BlockSpec((dim, dim), lambda bi, mi: (0, 0)),             # wp (scaled)
                pl.BlockSpec((1, dim), lambda bi, mi: (0, 0)),               # bp (scaled)
                pl.BlockSpec((dim, 1), lambda bi, mi: (0, 0)),               # wm
                pl.BlockSpec((1, dim), lambda bi, mi: (0, 0)),               # wm^T
                pl.BlockSpec((1, 1), lambda bi, mi: (0, 0)),                 # bm
            ],
            out_specs=[
                pl.BlockSpec((None, tm, n), lambda bi, mi: (bi, mi, 0)),     # sim
                pl.BlockSpec((None, tm, 1), lambda bi, mi: (bi, mi, 0)),     # z0
                pl.BlockSpec((None, tm, 1), lambda bi, mi: (bi, mi, 0)),     # row_lse
                pl.BlockSpec((None, 1, n), lambda bi, mi: (bi, 0, 0)),       # z1_row
                pl.BlockSpec((None, 1, n), lambda bi, mi: (bi, 0, 0)),       # col_lse
            ],
            scratch_shapes=[
                pltpu.VMEM((n, dim), jnp.float32),   # projected desc1 (hoisted per batch)
                pltpu.VMEM((1, n), jnp.float32),     # running column max
                pltpu.VMEM((1, n), jnp.float32),     # running column rescaled sum-exp
            ],
        ),
        compiler_params=cparams_p1,
    )(desc0, desc1, wp, bp, wm, wmt, bm)

    # Tiny O(M)/O(N) prep in the wrapper (negligible next to the (M,N) planes).
    a_col = _log_sigmoid(z0) - row_lse                 # (B, Mp, 1)
    c_row = _log_sigmoid(z1_row) - col_lse             # (B, 1, N)

    # ---- pass 2: pure streaming VPU pass -> inner block of scores ----
    inner = pl.pallas_call(
        _pass2_kernel,
        out_shape=jax.ShapeDtypeStruct((b, m_pad, n), out_dtype),
        grid_spec=pltpu.PrefetchScalarGridSpec(
            num_scalar_prefetch=0,
            grid=(b, n_mt),
            in_specs=[
                pl.BlockSpec((None, tm, n), lambda bi, mi: (bi, mi, 0)),     # sim
                pl.BlockSpec((None, tm, 1), lambda bi, mi: (bi, mi, 0)),     # a
                pl.BlockSpec((None, 1, n), lambda bi, mi: (bi, 0, 0)),       # c
            ],
            out_specs=pl.BlockSpec((None, tm, n), lambda bi, mi: (bi, mi, 0)),
        ),
        compiler_params=cparams_p2,
    )(sim, a_col, c_row)

    if mask_rows:                                      # drop the padded rows
        sim = sim[:, :m]
        inner = inner[:, :m]
        z0 = z0[:, :m]

    last_col = _log_sigmoid(-z0).astype(out_dtype)     # (B, M, 1)
    last_row = _log_sigmoid(-z1_row).astype(out_dtype) # (B, 1, N)

    if not stitch:
        return (inner, last_col, last_row), sim

    # Single pad (one scores-sized copy; corner stays 0) + two in-place edge writes.
    scores = jnp.pad(inner, ((0, 0), (0, 1), (0, 1)))
    scores = scores.at[:, :m, n].set(last_col[..., 0])
    scores = scores.at[:, m, :n].set(last_row[:, 0, :])
    return scores, sim


def reference(desc0, desc1, p, precision=jax.lax.Precision.HIGHEST):
    """Pure-JAX f32 mirror of the PyTorch MatchAssignment.forward."""
    md0 = jnp.einsum("bmd,de->bme", desc0, p["wp"], precision=precision) + p["bp"]
    md1 = jnp.einsum("bnd,de->bne", desc1, p["wp"], precision=precision) + p["bp"]
    d = md0.shape[-1]
    md0 = md0 / d ** 0.25
    md1 = md1 / d ** 0.25
    sim = jnp.einsum("bmd,bnd->bmn", md0, md1, precision=precision)
    z0 = jnp.einsum("bmd,do->bmo", desc0, p["wm"], precision=precision) + p["bm"]
    z1 = jnp.einsum("bnd,do->bno", desc1, p["wm"], precision=precision) + p["bm"]

    b, m, n = sim.shape
    cert = _log_sigmoid(z0) + jnp.swapaxes(_log_sigmoid(z1), 1, 2)
    scores0 = jax.nn.log_softmax(sim, axis=2)
    scores1 = jax.nn.log_softmax(sim, axis=1)
    scores = jnp.zeros((b, m + 1, n + 1), jnp.float32)
    scores = scores.at[:, :m, :n].set(scores0 + scores1 + cert)
    scores = scores.at[:, :m, n].set(_log_sigmoid(-z0[..., 0]))
    scores = scores.at[:, m, :n].set(_log_sigmoid(-z1[..., 0]))
    return scores, sim


def init_params(key, dim):
    """Deterministic init mimicking nn.Linear (uniform +/- 1/sqrt(fan_in)).
    Weights are stored transposed: (in_features, out_features)."""
    ks = jax.random.split(key, 4)
    bound = 1.0 / (float(dim) ** 0.5)
    wp = jax.random.uniform(ks[0], (dim, dim), jnp.float32, -bound, bound)   # final_proj
    bp = jax.random.uniform(ks[1], (1, dim), jnp.float32, -bound, bound)
    wm = jax.random.uniform(ks[2], (dim, 1), jnp.float32, -bound, bound)     # matchability
    bm = jax.random.uniform(ks[3], (1, 1), jnp.float32, -bound, bound)
    return dict(wp=wp, bp=bp, wm=wm, bm=bm)


if __name__ == "__main__":
    B, M, N, DIM, TM = 2, 32, 24, 32, 16    # small demo shapes; TM < M exercises tiling

    key = jax.random.PRNGKey(0)
    k0, k1, kp = jax.random.split(key, 3)
    desc0 = jax.random.normal(k0, (B, M, DIM), jnp.float32)
    desc1 = jax.random.normal(k1, (B, N, DIM), jnp.float32)
    params = init_params(kp, DIM)

    scores_ref, sim_ref = reference(desc0, desc1, params)

    # 1) fidelity config: f32 writeback + HIGHEST matmuls -> tight check.
    scores, sim = match_assignment(desc0, desc1, params, tm=TM,
                                   precision=jax.lax.Precision.HIGHEST,
                                   out_dtype=jnp.float32)
    jax.block_until_ready((scores, sim))
    assert scores.shape == (B, M + 1, N + 1) and sim.shape == (B, M, N)
    assert jnp.allclose(sim, sim_ref, atol=1e-4, rtol=1e-4), "sim mismatch (f32)"
    assert jnp.allclose(scores, scores_ref, atol=1e-4, rtol=1e-4), "scores mismatch (f32)"

    # 2) perf defaults: DEFAULT-precision MXU + bf16 writeback -> relaxed tolerance.
    scores_b, sim_b = match_assignment(desc0, desc1, params, tm=TM)
    jax.block_until_ready((scores_b, sim_b))
    assert sim_b.dtype == jnp.bfloat16 and scores_b.dtype == jnp.bfloat16
    assert jnp.allclose(sim_b.astype(jnp.float32), sim_ref, atol=5e-2, rtol=5e-2), \
        "sim mismatch (bf16)"
    assert jnp.allclose(scores_b.astype(jnp.float32), scores_ref, atol=1e-1, rtol=5e-2), \
        "scores mismatch (bf16)"

    # 3) padded-M path (M not divisible by TM): masked column stats + output slicing.
    M2 = 28
    desc0_p = desc0[:, :M2]
    scores_ref_p, sim_ref_p = reference(desc0_p, desc1, params)
    scores_p, sim_p = match_assignment(desc0_p, desc1, params, tm=TM,
                                       precision=jax.lax.Precision.HIGHEST,
                                       out_dtype=jnp.float32)
    jax.block_until_ready((scores_p, sim_p))
    assert scores_p.shape == (B, M2 + 1, N + 1) and sim_p.shape == (B, M2, N)
    assert jnp.allclose(sim_p, sim_ref_p, atol=1e-4, rtol=1e-4), "sim mismatch (padded)"
    assert jnp.allclose(scores_p, scores_ref_p, atol=1e-4, rtol=1e-4), "scores mismatch (padded)"

    print("KERNEL_OK")
</pallas_src>

<mosaic_0001>
module attributes {stable_mosaic.version = 11 : i64} {
  func.func @_pass1_kernel(%arg0: i32, %arg1: i32, %arg2: memref<1x16x32xf32, #tpu.memory_space<vmem>>, %arg3: memref<1x24x32xf32, #tpu.memory_space<vmem>>, %arg4: memref<32x32xf32, #tpu.memory_space<vmem>>, %arg5: memref<1x32xf32, #tpu.memory_space<vmem>>, %arg6: memref<32x1xf32, #tpu.memory_space<vmem>>, %arg7: memref<1x32xf32, #tpu.memory_space<vmem>>, %arg8: memref<1x1xf32, #tpu.memory_space<vmem>>, %arg9: memref<1x16x24xf32, #tpu.memory_space<vmem>>, %arg10: memref<1x16x1xf32, #tpu.memory_space<vmem>>, %arg11: memref<1x16x1xf32, #tpu.memory_space<vmem>>, %arg12: memref<1x1x24xf32, #tpu.memory_space<vmem>>, %arg13: memref<1x1x24xf32, #tpu.memory_space<vmem>>, %arg14: memref<24x32xf32, #tpu.memory_space<vmem>>, %arg15: memref<1x24xf32, #tpu.memory_space<vmem>>, %arg16: memref<1x24xf32, #tpu.memory_space<vmem>>) attributes {dimension_semantics = [#tpu.dimension_semantics<parallel>, #tpu.dimension_semantics<arbitrary>], iteration_bounds = array<i64: 2, 2>, scalar_prefetch = 0 : i64, scratch_operands = 3 : i64, tpu.core_type = #tpu.core_type<tc>, window_params = [{transform_indices = @transform_0, window_bounds = array<i64: 1, 16, 32>}, {transform_indices = @transform_1, window_bounds = array<i64: 1, 24, 32>}, {pipeline_mode = #tpu.pipeline_mode<synchronous>, transform_indices = @transform_2, window_bounds = array<i64: 32, 32>}, {pipeline_mode = #tpu.pipeline_mode<synchronous>, transform_indices = @transform_3, window_bounds = array<i64: 1, 32>}, {pipeline_mode = #tpu.pipeline_mode<synchronous>, transform_indices = @transform_4, window_bounds = array<i64: 32, 1>}, {pipeline_mode = #tpu.pipeline_mode<synchronous>, transform_indices = @transform_5, window_bounds = array<i64: 1, 32>}, {pipeline_mode = #tpu.pipeline_mode<synchronous>, transform_indices = @transform_6, window_bounds = array<i64: 1, 1>}, {transform_indices = @transform_7, window_bounds = array<i64: 1, 16, 24>}, {transform_indices = @transform_8, window_bounds = array<i64: 1, 16, 1>}, {transform_indices = @transform_9, window_bounds = array<i64: 1, 16, 1>}, {transform_indices = @transform_10, window_bounds = array<i64: 1, 1, 24>}, {transform_indices = @transform_11, window_bounds = array<i64: 1, 1, 24>}]} {
    %c0_i32 = arith.constant 0 : i32
    %0 = arith.cmpi eq, %arg1, %c0_i32 : i32
    %1 = arith.extui %0 : i1 to i32
    %c0_i32_0 = arith.constant 0 : i32
    %2 = arith.cmpi ne, %1, %c0_i32_0 : i32
    scf.if %2 {
      %c0_37 = arith.constant 0 : index
      %c0_38 = arith.constant 0 : index
      %c0_39 = arith.constant 0 : index
      %54 = vector.load %arg3[%c0_37, %c0_38, %c0_39] : memref<1x24x32xf32, #tpu.memory_space<vmem>>, vector<1x24x32xf32>
      %55 = vector.shape_cast %54 : vector<1x24x32xf32> to vector<24x32xf32>
      %c0_40 = arith.constant 0 : index
      %c0_41 = arith.constant 0 : index
      %56 = vector.load %arg4[%c0_40, %c0_41] : memref<32x32xf32, #tpu.memory_space<vmem>>, vector<32x32xf32>
      %cst_42 = arith.constant dense<0.000000e+00> : vector<24x32xf32>
      %57 = tpu.matmul %55, %56, %cst_42 {dimension_numbers = #tpu.dot_dimension_numbers<[1], [0], [0], [1], [0, 0, 1, 1], [], []>, precision = #tpu.contract_precision<fp32>} : vector<24x32xf32>, vector<32x32xf32>, vector<24x32xf32> -> vector<24x32xf32>
      %c0_43 = arith.constant 0 : index
      %c0_44 = arith.constant 0 : index
      %58 = vector.load %arg5[%c0_43, %c0_44] : memref<1x32xf32, #tpu.memory_space<vmem>>, vector<1x32xf32>
      %59 = vector.broadcast %58 : vector<1x32xf32> to vector<24x32xf32>
      %60 = arith.addf %57, %59 : vector<24x32xf32>
      %c0_45 = arith.constant 0 : index
      %c0_46 = arith.constant 0 : index
      %61 = vector.load %arg14[%c0_45, %c0_46] : memref<24x32xf32, #tpu.memory_space<vmem>>, vector<24x32xf32>
      tpu.vector_store %arg14[%c0_45, %c0_46], %60 {strides = array<i32>} : memref<24x32xf32, #tpu.memory_space<vmem>>, vector<24x32xf32>,
      %c0_47 = arith.constant 0 : index
      %c0_48 = arith.constant 0 : index
      %62 = vector.load %arg7[%c0_47, %c0_48] : memref<1x32xf32, #tpu.memory_space<vmem>>, vector<1x32xf32>
      %cst_49 = arith.constant dense<0.000000e+00> : vector<1x24xf32>
      %63 = tpu.matmul %62, %55, %cst_49 {dimension_numbers = #tpu.dot_dimension_numbers<[1], [1], [0], [0], [0, 0, 1, 0], [], []>, precision = #tpu.contract_precision<fp32>} : vector<1x32xf32>, vector<24x32xf32>, vector<1x24xf32> -> vector<1x24xf32>
      %c0_50 = arith.constant 0 : index
      %c0_51 = arith.constant 0 : index
      %64 = vector.load %arg8[%c0_50, %c0_51] : memref<1x1xf32, #tpu.memory_space<vmem>>, vector<1x1xf32>
      %65 = vector.broadcast %64 : vector<1x1xf32> to vector<1x24xf32>
      %66 = arith.addf %63, %65 : vector<1x24xf32>
      %c0_52 = arith.constant 0 : index
      %c0_53 = arith.constant 0 : index
      %c0_54 = arith.constant 0 : index
      %67 = vector.load %arg12[%c0_52, %c0_53, %c0_54] : memref<1x1x24xf32, #tpu.memory_space<vmem>>, vector<1x1x24xf32>
      %68 = vector.shape_cast %67 : vector<1x1x24xf32> to vector<1x24xf32>
      %69 = vector.shape_cast %66 : vector<1x24xf32> to vector<1x1x24xf32>
      tpu.vector_store %arg12[%c0_52, %c0_53, %c0_54], %69 {strides = array<i32>} : memref<1x1x24xf32, #tpu.memory_space<vmem>>, vector<1x1x24xf32>,
      %cst_55 = arith.constant 0xFF800000 : f32
      %70 = vector.broadcast %cst_55 : f32 to vector<1x24xf32>
      %c0_56 = arith.constant 0 : index
      %c0_57 = arith.constant 0 : index
      %71 = vector.load %arg15[%c0_56, %c0_57] : memref<1x24xf32, #tpu.memory_space<vmem>>, vector<1x24xf32>
      tpu.vector_store %arg15[%c0_56, %c0_57], %70 {strides = array<i32>} : memref<1x24xf32, #tpu.memory_space<vmem>>, vector<1x24xf32>,
      %cst_58 = arith.constant 0.000000e+00 : f32
      %72 = vector.broadcast %cst_58 : f32 to vector<1x24xf32>
      %c0_59 = arith.constant 0 : index
      %c0_60 = arith.constant 0 : index
      %73 = vector.load %arg16[%c0_59, %c0_60] : memref<1x24xf32, #tpu.memory_space<vmem>>, vector<1x24xf32>
      tpu.vector_store %arg16[%c0_59, %c0_60], %72 {strides = array<i32>} : memref<1x24xf32, #tpu.memory_space<vmem>>, vector<1x24xf32>,
    } else {
    }
    %c0 = arith.constant 0 : index
    %c0_1 = arith.constant 0 : index
    %c0_2 = arith.constant 0 : index
    %3 = vector.load %arg2[%c0, %c0_1, %c0_2] : memref<1x16x32xf32, #tpu.memory_space<vmem>>, vector<1x16x32xf32>
    %4 = vector.shape_cast %3 : vector<1x16x32xf32> to vector<16x32xf32>
    %c0_3 = arith.constant 0 : index
    %c0_4 = arith.constant 0 : index
    %5 = vector.load %arg4[%c0_3, %c0_4] : memref<32x32xf32, #tpu.memory_space<vmem>>, vector<32x32xf32>
    %cst = arith.constant dense<0.000000e+00> : vector<16x32xf32>
    %6 = tpu.matmul %4, %5, %cst {dimension_numbers = #tpu.dot_dimension_numbers<[1], [0], [0], [1], [0, 0, 1, 1], [], []>, precision = #tpu.contract_precision<fp32>} : vector<16x32xf32>, vector<32x32xf32>, vector<16x32xf32> -> vector<16x32xf32>
    %c0_5 = arith.constant 0 : index
    %c0_6 = arith.constant 0 : index
    %7 = vector.load %arg5[%c0_5, %c0_6] : memref<1x32xf32, #tpu.memory_space<vmem>>, vector<1x32xf32>
    %8 = vector.broadcast %7 : vector<1x32xf32> to vector<16x32xf32>
    %9 = arith.addf %6, %8 : vector<16x32xf32>
    %c0_7 = arith.constant 0 : index
    %c0_8 = arith.constant 0 : index
    %10 = vector.load %arg14[%c0_7, %c0_8] : memref<24x32xf32, #tpu.memory_space<vmem>>, vector<24x32xf32>
    %cst_9 = arith.constant dense<0.000000e+00> : vector<16x24xf32>
    %11 = tpu.matmul %9, %10, %cst_9 {dimension_numbers = #tpu.dot_dimension_numbers<[1], [1], [0], [0], [0, 0, 1, 0], [], []>, precision = #tpu.contract_precision<fp32>} : vector<16x32xf32>, vector<24x32xf32>, vector<16x24xf32> -> vector<16x24xf32>
    %c0_10 = arith.constant 0 : index
    %c0_11 = arith.constant 0 : index
    %c0_12 = arith.constant 0 : index
    %12 = vector.load %arg9[%c0_10, %c0_11, %c0_12] : memref<1x16x24xf32, #tpu.memory_space<vmem>>, vector<1x16x24xf32>
    %13 = vector.shape_cast %12 : vector<1x16x24xf32> to vector<16x24xf32>
    %14 = vector.shape_cast %11 : vector<16x24xf32> to vector<1x16x24xf32>
    tpu.vector_store %arg9[%c0_10, %c0_11, %c0_12], %14 {strides = array<i32>} : memref<1x16x24xf32, #tpu.memory_space<vmem>>, vector<1x16x24xf32>,
    %c0_13 = arith.constant 0 : index
    %c0_14 = arith.constant 0 : index
    %15 = vector.load %arg6[%c0_13, %c0_14] : memref<32x1xf32, #tpu.memory_space<vmem>>, vector<32x1xf32>
    %cst_15 = arith.constant dense<0.000000e+00> : vector<16x1xf32>
    %16 = tpu.matmul %4, %15, %cst_15 {dimension_numbers = #tpu.dot_dimension_numbers<[1], [0], [0], [1], [0, 0, 1, 1], [], []>, precision = #tpu.contract_precision<fp32>} : vector<16x32xf32>, vector<32x1xf32>, vector<16x1xf32> -> vector<16x1xf32>
    %c0_16 = arith.constant 0 : index
    %c0_17 = arith.constant 0 : index
    %17 = vector.load %arg8[%c0_16, %c0_17] : memref<1x1xf32, #tpu.memory_space<vmem>>, vector<1x1xf32>
    %18 = vector.broadcast %17 : vector<1x1xf32> to vector<16x1xf32>
    %19 = arith.addf %16, %18 : vector<16x1xf32>
    %c0_18 = arith.constant 0 : index
    %c0_19 = arith.constant 0 : index
    %c0_20 = arith.constant 0 : index
    %20 = vector.load %arg10[%c0_18, %c0_19, %c0_20] : memref<1x16x1xf32, #tpu.memory_space<vmem>>, vector<1x16x1xf32>
    %21 = vector.shape_cast %20 : vector<1x16x1xf32> to vector<16x1xf32>
    %22 = vector.shape_cast %19 : vector<16x1xf32> to vector<1x16x1xf32>
    tpu.vector_store %arg10[%c0_18, %c0_19, %c0_20], %22 {strides = array<i32>} : memref<1x16x1xf32, #tpu.memory_space<vmem>>, vector<1x16x1xf32>,
    %cst_21 = arith.constant dense<0xFF800000> : vector<16xf32>
    %23 = vector.multi_reduction <maximumf>, %11, %cst_21 [1] : vector<16x24xf32> to vector<16xf32>
    %24 = vector.shape_cast %23 : vector<16xf32> to vector<16x1xf32>
    %25 = vector.broadcast %24 : vector<16x1xf32> to vector<16x24xf32>
    %26 = arith.subf %11, %25 : vector<16x24xf32>
    %27 = math.exp %26 : vector<16x24xf32>
    %cst_22 = arith.constant dense<0.000000e+00> : vector<16xf32>
    %28 = vector.multi_reduction <add>, %27, %cst_22 [1] : vector<16x24xf32> to vector<16xf32>
    %29 = vector.shape_cast %28 : vector<16xf32> to vector<16x1xf32>
    %30 = math.log %29 : vector<16x1xf32>
    %31 = arith.addf %24, %30 : vector<16x1xf32>
    %c0_23 = arith.constant 0 : index
    %c0_24 = arith.constant 0 : index
    %c0_25 = arith.constant 0 : index
    %32 = vector.load %arg11[%c0_23, %c0_24, %c0_25] : memref<1x16x1xf32, #tpu.memory_space<vmem>>, vector<1x16x1xf32>
    %33 = vector.shape_cast %32 : vector<1x16x1xf32> to vector<16x1xf32>
    %34 = vector.shape_cast %31 : vector<16x1xf32> to vector<1x16x1xf32>
    tpu.vector_store %arg11[%c0_23, %c0_24, %c0_25], %34 {strides = array<i32>} : memref<1x16x1xf32, #tpu.memory_space<vmem>>, vector<1x16x1xf32>,
    %c0_26 = arith.constant 0 : index
    %c0_27 = arith.constant 0 : index
    %35 = vector.load %arg15[%c0_26, %c0_27] : memref<1x24xf32, #tpu.memory_space<vmem>>, vector<1x24xf32>
    %cst_28 = arith.constant dense<0xFF800000> : vector<24xf32>
    %36 = vector.multi_reduction <maximumf>, %11, %cst_28 [0] : vector<16x24xf32> to vector<24xf32>
    %37 = vector.shape_cast %36 : vector<24xf32> to vector<1x24xf32>
    %38 = arith.maximumf %35, %37 : vector<1x24xf32>
    %c0_29 = arith.constant 0 : index
    %c0_30 = arith.constant 0 : index
    %39 = vector.load %arg16[%c0_29, %c0_30] : memref<1x24xf32, #tpu.memory_space<vmem>>, vector<1x24xf32>
    %40 = arith.subf %35, %38 : vector<1x24xf32>
    %41 = math.exp %40 : vector<1x24xf32>
    %42 = arith.mulf %39, %41 : vector<1x24xf32>
    %43 = vector.broadcast %38 : vector<1x24xf32> to vector<16x24xf32>
    %44 = arith.subf %11, %43 : vector<16x24xf32>
    %45 = math.exp %44 : vector<16x24xf32>
    %cst_31 = arith.constant dense<0.000000e+00> : vector<24xf32>
    %46 = vector.multi_reduction <add>, %45, %cst_31 [0] : vector<16x24xf32> to vector<24xf32>
    %47 = vector.shape_cast %46 : vector<24xf32> to vector<1x24xf32>
    %48 = arith.addf %42, %47 : vector<1x24xf32>
    %c0_32 = arith.constant 0 : index
    %c0_33 = arith.constant 0 : index
    %49 = vector.load %arg16[%c0_32, %c0_33] : memref<1x24xf32, #tpu.memory_space<vmem>>, vector<1x24xf32>
    tpu.vector_store %arg16[%c0_32, %c0_33], %48 {strides = array<i32>} : memref<1x24xf32, #tpu.memory_space<vmem>>, vector<1x24xf32>,
    %c0_34 = arith.constant 0 : index
    %c0_35 = arith.constant 0 : index
    %50 = vector.load %arg15[%c0_34, %c0_35] : memref<1x24xf32, #tpu.memory_space<vmem>>, vector<1x24xf32>
    tpu.vector_store %arg15[%c0_34, %c0_35], %38 {strides = array<i32>} : memref<1x24xf32, #tpu.memory_space<vmem>>, vector<1x24xf32>,
    %c1_i32 = arith.constant 1 : i32
    %51 = arith.cmpi eq, %arg1, %c1_i32 : i32
    %52 = arith.extui %51 : i1 to i32
    %c0_i32_36 = arith.constant 0 : i32
    %53 = arith.cmpi ne, %52, %c0_i32_36 : i32
    scf.if %53 {
      %c0_37 = arith.constant 0 : index
      %c0_38 = arith.constant 0 : index
      %54 = vector.load %arg15[%c0_37, %c0_38] : memref<1x24xf32, #tpu.memory_space<vmem>>, vector<1x24xf32>
      %c0_39 = arith.constant 0 : index
      %c0_40 = arith.constant 0 : index
      %55 = vector.load %arg16[%c0_39, %c0_40] : memref<1x24xf32, #tpu.memory_space<vmem>>, vector<1x24xf32>
      %56 = math.log %55 : vector<1x24xf32>
      %57 = arith.addf %54, %56 : vector<1x24xf32>
      %c0_41 = arith.constant 0 : index
      %c0_42 = arith.constant 0 : index
      %c0_43 = arith.constant 0 : index
      %58 = vector.load %arg13[%c0_41, %c0_42, %c0_43] : memref<1x1x24xf32, #tpu.memory_space<vmem>>, vector<1x1x24xf32>
      %59 = vector.shape_cast %58 : vector<1x1x24xf32> to vector<1x24xf32>
      %60 = vector.shape_cast %57 : vector<1x24xf32> to vector<1x1x24xf32>
      tpu.vector_store %arg13[%c0_41, %c0_42, %c0_43], %60 {strides = array<i32>} : memref<1x1x24xf32, #tpu.memory_space<vmem>>, vector<1x1x24xf32>,
    } else {
    }
    return
  }
  func.func @transform_0(%arg0: i32, %arg1: i32) -> (i32, i32, i32) {
    %c0_i32 = arith.constant 0 : i32
    %c0_i32_0 = arith.constant 0 : i32
    return %arg0, %arg1, %c0_i32 : i32, i32, i32
  }
  func.func @transform_1(%arg0: i32, %arg1: i32) -> (i32, i32, i32) {
    %c0_i32 = arith.constant 0 : i32
    %c0_i32_0 = arith.constant 0 : i32
    %c0_i32_1 = arith.constant 0 : i32
    return %arg0, %c0_i32, %c0_i32_0 : i32, i32, i32
  }
  func.func @transform_2(%arg0: i32, %arg1: i32) -> (i32, i32) {
    %c0_i32 = arith.constant 0 : i32
    %c0_i32_0 = arith.constant 0 : i32
    %c0_i32_1 = arith.constant 0 : i32
    return %c0_i32, %c0_i32_0 : i32, i32
  }
  func.func @transform_3(%arg0: i32, %arg1: i32) -> (i32, i32) {
    %c0_i32 = arith.constant 0 : i32
    %c0_i32_0 = arith.constant 0 : i32
    %c0_i32_1 = arith.constant 0 : i32
    return %c0_i32, %c0_i32_0 : i32, i32
  }
  func.func @transform_4(%arg0: i32, %arg1: i32) -> (i32, i32) {
    %c0_i32 = arith.constant 0 : i32
    %c0_i32_0 = arith.constant 0 : i32
    %c0_i32_1 = arith.constant 0 : i32
    return %c0_i32, %c0_i32_0 : i32, i32
  }
  func.func @transform_5(%arg0: i32, %arg1: i32) -> (i32, i32) {
    %c0_i32 = arith.constant 0 : i32
    %c0_i32_0 = arith.constant 0 : i32
    %c0_i32_1 = arith.constant 0 : i32
    return %c0_i32, %c0_i32_0 : i32, i32
  }
  func.func @transform_6(%arg0: i32, %arg1: i32) -> (i32, i32) {
    %c0_i32 = arith.constant 0 : i32
    %c0_i32_0 = arith.constant 0 : i32
    %c0_i32_1 = arith.constant 0 : i32
    return %c0_i32, %c0_i32_0 : i32, i32
  }
  func.func @transform_7(%arg0: i32, %arg1: i32) -> (i32, i32, i32) {
    %c0_i32 = arith.constant 0 : i32
    %c0_i32_0 = arith.constant 0 : i32
    return %arg0, %arg1, %c0_i32 : i32, i32, i32
  }
  func.func @transform_8(%arg0: i32, %arg1: i32) -> (i32, i32, i32) {
    %c0_i32 = arith.constant 0 : i32
    %c0_i32_0 = arith.constant 0 : i32
    return %arg0, %arg1, %c0_i32 : i32, i32, i32
  }
  func.func @transform_9(%arg0: i32, %arg1: i32) -> (i32, i32, i32) {
    %c0_i32 = arith.constant 0 : i32
    %c0_i32_0 = arith.constant 0 : i32
    return %arg0, %arg1, %c0_i32 : i32, i32, i32
  }
  func.func @transform_10(%arg0: i32, %arg1: i32) -> (i32, i32, i32) {
    %c0_i32 = arith.constant 0 : i32
    %c0_i32_0 = arith.constant 0 : i32
    %c0_i32_1 = arith.constant 0 : i32
    return %arg0, %c0_i32, %c0_i32_0 : i32, i32, i32
  }
  func.func @transform_11(%arg0: i32, %arg1: i32) -> (i32, i32, i32) {
    %c0_i32 = arith.constant 0 : i32
    %c0_i32_0 = arith.constant 0 : i32
    %c0_i32_1 = arith.constant 0 : i32
    return %arg0, %c0_i32, %c0_i32_0 : i32, i32, i32
  }
}

</mosaic_0001>

<bundles_post_ra>
// kernel: tpu_custom_call.1
= control target key start
LH: loop header
LB: loop body
LE: loop exit
PB: predicated region body
PF: predicated region fallthrough
CT: control target
= control target key end

     0   :  { %s5403_s0 = inlined_call_operand.hbm [shape: f32[2,32,32], index: 0, kind: input, shape index: {}]   ;;  %s5404_s1 = inlined_call_operand.hbm [shape: f32[2,24,32], index: 1, kind: input, shape index: {}]   ;;  %s5405_s2 = inlined_call_operand.vmem [shape: f32[32,32], index: 2, kind: input, shape index: {}]   ;;  %s5406_s3 = inlined_call_operand.vmem [shape: f32[1,32], index: 3, kind: input, shape index: {}]   ;;  %s5407_s4 = inlined_call_operand.vmem [shape: f32[32,1], index: 4, kind: input, shape index: {}]   ;;  %s5408_s5 = inlined_call_operand.vmem [shape: f32[1,32], index: 5, kind: input, shape index: {}]   ;;  %s5409_s6 = inlined_call_operand.<no memory space> [shape: f32[1,1], index: 6, kind: input, shape index: {}]   ;;  %s5410_s7 = inlined_call_operand.vmem [shape: f32[2,32,24], index: 7, kind: output, shape index: {0}]   ;;  %s5411_s8 = inlined_call_operand.vmem [shape: f32[2,32,1], index: 8, kind: output, shape index: {1}]   ;;  %s5412_s9 = inlined_call_operand.vmem [shape: f32[2,32,1], index: 9, kind: output, shape index: {2}]   ;;  %s5413_s10 = inlined_call_operand.hbm [shape: f32[2,1,24], index: 10, kind: output, shape index: {3}]   ;;  %s5414_s11 = inlined_call_operand.hbm [shape: f32[2,1,24], index: 11, kind: output, shape index: {4}]  }
   0x1   :  { %5429 = sst [smem:[#allocation25_spill]] %s5403_s0  ;;  %v17_v0 = vstv %s5409_s6 }
   0x2   :  { %5430 = sst [smem:[#allocation26_spill]] %s5404_s1  ;;  %18 = vst [vmem:[#allocation5] sm:$0x1] %v17_v0 }
   0x3   :  { %5431 = sst [smem:[#allocation27_spill]] %s5405_s2 }
   0x4   :  { %5432 = sst [smem:[#allocation28_spill]] %s5406_s3 }
   0x5   :  { %5433 = sst [smem:[#allocation29_spill]] %s5407_s4 }
   0x6   :  { %5434 = sst [smem:[#allocation30_spill]] %s5408_s5 }
   0x7   :  { %5435 = sst [smem:[#allocation31_spill]] %s5411_s8 }
   0x8   :  { %5436 = sst [smem:[#allocation32_spill]] %s5412_s9 }
   0x9   :  { %5437 = sst [smem:[#allocation33_spill]] %s5413_s10 }
   0xa   :  { %5438 = sst [smem:[#allocation34_spill]] %s5414_s11 }
   0xb   :  { %19 = vsyncpa [#allocation7], 0 }
   0xc   :  { %21 = vsyncpa [#allocation7 + $0x1], 0 }
   0xd   :  { %22 = vsyncpa [#allocation10], 0 }
   0xe   :  { %24 = vsyncpa [#allocation10 + $0x1], 0 }
   0xf   :  { %25 = vsyncpa [#allocation8], 0 }
  0x10   :  { %27 = vsyncpa [#allocation8 + $0x1], 0 }
  0x11   :  { %28 = vsyncpa [#allocation13], 0 }
  0x12   :  { %30 = vsyncpa [#allocation13 + $0x1], 0  ;;  %s4608_s19 = smov 0   ;;  %s4610_s20 = smov 0  }
  0x13   :  { %s4612_s21 = smov 0   ;;  %s4614_s22 = smov 0  }
  0x14   :  { %s4616_s23 = smov 0   ;;  %s4618_s6 = smov 0  }
  0x15   :  { %s4620_s24 = smov 0   ;;  %s4622_s25 = smov 0  }
  0x16   :  { %s4624_s26 = smov 0   ;;  %s4626_s27 = smov 0  }
  0x17   :  { %s4628_s28 = smov 0  }
  0x18 LB: > { %5439 = sst [smem:[#allocation18_spill]] %s4509_s23  ;;  %s5415_s29 = sadd.s32 4294967295, %s4533_s28   ;;  %s4533_s28 = sphi %s4628_s28, %s36_s28   ;;  %s4529_s27 = sphi %s4626_s27, %s5479_s27   ;;  %s4525_s26 = sphi %s4624_s26, %s5478_s26   ;;  %s4521_s25 = sphi %s4622_s25, %s5477_s25   ;;  %s4517_s24 = sphi %s4620_s24, %s5476_s24   ;;  %s4513_s6 = sphi %s4618_s6, %s5475_s6   ;;  %s4509_s23 = sphi %s4616_s23, %s5474_s23   ;;  %s4505_s22 = sphi %s4614_s22, %s5473_s22   ;;  %s4501_s21 = sphi %s4612_s21, %s5482_s21   ;;  %s4497_s20 = sphi %s4610_s20, %s5481_s20   ;;  %s4493_s19 = sphi %s4608_s19, %s5480_s19  }
  0x19   : > { %5440 = sst [smem:[#allocation19_spill]] %s4513_s6  ;;  %s45_s30 = sadd.s32 1, %s4525_s26 }
  0x1a   : > { %5441 = sst [smem:[#allocation20_spill]] %s4525_s26  ;;  %p46_p0 = scmp.ge.s32.totalorder %s45_s30, 2 }
  0x1b   : > { %5442 = sst [smem:[#allocation21_spill]] %s4529_s27  ;;  %s48_s12 = sadd.s32 1, %s4529_s27 }
  0x1c   : > { %s57_s13 = sadd.s32 1, %s4513_s6  ;;  %p64_p1 = scmp.ne.s32.totalorder %s4513_s6, %s4509_s23 }
  0x1d   : > { %s5484_s30 = smov (%p46_p0, %s45_s30), 0  ;;  %s5486_s12 = smov (!%p46_p0, %s48_s12), %s4529_s27 }
  0x1e   : > { %5443 = sst [smem:[#allocation22_spill]] %s5484_s30  ;;  %s53_s14 = ssub.s32 %s4525_s26, %s5484_s30 }
  0x1f   : > { %p65_p2 = scmp.eq.s32.totalorder %s4533_s28, 0  ;;  %p50_p3 = scmp.ge.s32.totalorder %s5486_s12, 2 }
  0x20   : > { %p70_p4 = scmp.ne.s32.totalorder %s4509_s23, %s4505_s22  ;;  %p4682_p6 = scmp.eq.s32.totalorder %s5415_s29, 0 }
  0x21   : > { %p4676_p5 = por %p65_p2, %p64_p1  ;;  %s5488_s12 = smov (%p50_p3, %s5486_s12), 0 }
  0x22   : > { %5446 = sst [smem:[#allocation23_spill]] %s5488_s12  ;;  %p4690_p7 = por %p4682_p6, %p70_p4 }
  0x23   : > { %s4696_s18 = ssub.s32 %s4529_s27, %s5488_s12  ;;  %p4210_p8 = scmp.lt.s32.totalorder %s4533_s28, 4 }
  0x24   : > { %s54_s22 = sor.u32 %s53_s14, %s4696_s18  ;;  %p81_p9 = scmp.eq.s32.totalorder %s4696_s18, 0 }
  0x25   : > { %p55_p10 = scmp.eq.s32.totalorder %s54_s22, 0  ;;  %s376_s29 = sand.u32 1, %s4513_s6  }
  0x26   : > { %s3650_s30 = sshll.u32 %s376_s29, 4  ;;  %s3651_s10 = sshll.u32 %s4525_s26, 1 }
  0x27   : > { %s4703_s11 = scalar_select %p55_p10, %s4513_s6, %s57_s13  }
  0x28   : > { %s3652_s4 = sshll.u32 %s4529_s27, 2  ;;  %s380_s3 = scalar_lea.vmem [#allocation6], %s3650_s30 }
  0x29   : > { %5448 = sst [smem:[#allocation24_spill]] %s4703_s11  ;;  %s389_s5 = sshll.u32 %s380_s3, 4  ;;  %s390_s5 = int_to_ptr.vmem [resolvable:$true] %s389_s5 }
  0x2a   : > { %s386_s2 = sadd.s32 %s3652_s4, %s3651_s10  ;;  %p4711_p11 = pnand %p4210_p8, %p4676_p5 }
  0x2b   : > { %s3653_s9 = sshll.u32 %s386_s2, 7  ;;  %s5450_s0 = sld [smem:[#allocation25_spill]] }
  0x2c   : > { %s377_s13 = scalar_lea.sflag [#allocation7], %s376_s29  ;;  %p4325_p12 = pneg %p4711_p11 }
  0x2d   : > { %s4336_s26 = scalar_lea.vmem %s390_s5, 256  ;;  %s4535_s3 = smov [#allocation6]  }
  0x2e   : > { %p4337_p13 = scmp.ne.s32.totalorder %s390_s5, %s4336_s26  ;;  %s4341_s2 = sshll.u32 %s4535_s3, 4  ;;  %s4342_s2 = int_to_ptr.vmem [resolvable:$false] %s4341_s2 }
  0x2f   : > { %s4343_s4 = scalar_lea.vmem %s4342_s2, 512  ;;  %p4344_p3 = scmp.lt.s32.totalorder %s390_s5, %s4342_s2 }
  0x30   : > { %p4339_p0 = pnand %p4337_p13, %p4325_p12  ;;  %p4345_p4 = scmp.lt.s32.totalorder %s4343_s4, %s4336_s26 }
  0x31   : > { %s388_s22 = scalar_lea.hbm %s5450_s0, %s3653_s9 }
  0x32   : > { %p4340_p1 = pneg %p4339_p0  ;;  %p4346_p5 = por %p4345_p4, %p4344_p3 }
  0x34   : > { %p4347_p10 = pnand %p4346_p5, %p4340_p1 }
  0x36   : > { %4350 = shalt.err (!%p4347_p10)
}
  0x37   : > { %s5424_s10 = smov 128   ;;  %s5425_s8 = smov 8  }
  0x38   : > { %4199 = dma.hbm_to_vmem [thread:$0]  (!%p4711_p11), %s388_s22, 256, %s390_s5, %s377_s13, %s5424_s10, %s5424_s10, %s5425_s8  }
  0x39   : > { %p3655_p12 = scmp.ge.s32.totalorder %s4533_s28, 1  ;;  %p418_p13 = scmp.lt.s32.totalorder %s4533_s28, 5 }
  0x3a   : > { %s3647_s26 = sadd.s32 4294967294, %s4533_s28   ;;  %s83_s29 = sadd.s32 1, %s4501_s21 }
  0x3b   : > { %p4727_p0 = pnand %p3655_p12, %p418_p13  ;;  %p90_p1 = scmp.ne.s32.totalorder %s4501_s21, %s4497_s20 }
  0x3c   : > { %s4738_s30 = scalar_select %p81_p9, %s4501_s21, %s83_s29  }
  0x3d   : > { %p92_p3 = por %p90_p1, %p65_p2  ;;  %p96_p4 = scmp.ne.s32.totalorder %s4497_s20, %s4493_s19 }
  0x3e   : > { %s5452_s12 = sadd.s32 4294967295, %s4533_s28   ;;  %p315_p11 = scmp.eq.s32.totalorder %s3647_s26, 3 }
  0x3f   : > { %p309_p5 = scmp.eq.s32.totalorder %s5452_s12, 3  ;;  %p4748_p10 = por %p96_p4, %p4682_p6 }
  0x40   : > { %s399_s15 = sand.u32 1, %s4501_s21   ;;  %p4757_p13 = por %p315_p11, %p96_p4 }
  0x41   : > { %p4753_p12 = por %p309_p5, %p90_p1  ;;  %s4185_s22 = smul.u32 24, %s399_s15 }
  0x42   : > { %s4186_s13 = smul.u32 384, %s4529_s27  ;;  %p4764_p2 = pnand %p4210_p8, %p92_p3 }
  0x43   : > { %s5457_s1 = sld [smem:[#allocation26_spill]]  ;;  %s403_s26 = scalar_lea.vmem [#allocation9], %s4185_s22 }
  0x44   : > { %s410_s29 = sshll.u32 %s403_s26, 4  ;;  %s400_s12 = scalar_lea.sflag [#allocation10], %s399_s15  ;;  %s411_s29 = int_to_ptr.vmem [resolvable:$true] %s410_s29 }
  0x45   : > { %p4353_p6 = pneg %p4764_p2  ;;  %s4364_s10 = scalar_lea.vmem %s411_s29, 384 }
  0x46   : > { %p4365_p9 = scmp.ne.s32.totalorder %s411_s29, %s4364_s10  ;;  %s4538_s8 = smov [#allocation9]  }
  0x47   : > { %s4369_s0 = sshll.u32 %s4538_s8, 4  ;;  %s4370_s0 = int_to_ptr.vmem [resolvable:$false] %s4369_s0 }
  0x48   : > { %p4367_p1 = pnand %p4365_p9, %p4353_p6  ;;  %s4371_s27 = scalar_lea.vmem %s4370_s0, 768 }
  0x49   : > { %s409_s4 = scalar_lea.hbm %s5457_s1, %s4186_s13  ;;  %p4372_p8 = scmp.lt.s32.totalorder %s411_s29, %s4370_s0 }
  0x4a   : > { %p4368_p4 = pneg %p4367_p1  ;;  %p4373_p3 = scmp.lt.s32.totalorder %s4371_s27, %s4364_s10 }
  0x4c   : > { %p4374_p5 = por %p4373_p3, %p4372_p8 }
  0x4e   : > { %p4375_p11 = pnand %p4374_p5, %p4368_p4 }
  0x50   : > { %4378 = shalt.err (!%p4375_p11)
}
  0x51   : > { %s5458_s22 = smov 8   ;;  %s5459_s13 = smov 128  }
  0x52   : > { %4202 = dma.hbm_to_vmem [thread:$0]  (!%p4764_p2), %s409_s4, 384, %s411_s29, %s400_s12, %s5459_s13, %s5459_s13, %s5458_s22  }
  0x53   : > { %422 = sbr.rel (%p4727_p0) target bundleno = 1247 (0x4df), region = 48  ;;  %s424_s15 = sand.u32 (!%p4727_p0), 1, %s4509_s23  }
  0x54   : > { %s4781_s8 = sshll.u32 (!%p4727_p0), %s424_s15, 4  ;;  %s425_s0 = scalar_lea.sflag (!%p4727_p0), [#allocation7], %s424_s15 }
  0x58   : > { %4476 = dma.done.wait (%p4690_p7), %s425_s0, 256  }
  0x59   : > { %4478 = vsyncadd (%p4690_p7), %s425_s0, 4294967040  ;;  %s4789_s10 = sand.u32 1, %s4497_s20  }
  0x5a   : > { %s4187_s9 = smul.u32 24, %s4789_s10  ;;  %s434_s3 = scalar_lea.sflag [#allocation10], %s4789_s10 }
  0x5c   : > { %s4793_s16 = scalar_lea.vmem [#allocation9], %s4187_s9 }
  0x5d   : > { %4480 = dma.done.wait (%p4748_p10), %s434_s3, 384  }
  0x5e   : > { %4482 = vsyncadd (%p4748_p10), %s434_s3, 4294966912  ;;  %s3657_s17 = sshll.u32 %s4517_s24, 1  ;;  %p513_p7 = scmp.lt.s32.totalorder %s4521_s25, 1 }
  0x5f   : > { %p515_p0 = scmp.lt.s32.totalorder %s3657_s17, 3  ;;  %s5460_s0 = sld [smem:[#allocation31_spill]] }
  0x60   : > { %s514_s2 = scalar_select %p513_p7, %s4521_s25, 1 }
  0x61   : > { %s5490_s17 = smov (!%p515_p0, %s3657_s17), 3  ;;  %s5461_s1 = sld [smem:[#allocation32_spill]] }
  0x62   : > { %s3658_s4 = sshll.u32 %s514_s2, 2  ;;  %s504_s6 = scalar_lea.vmem [#allocation11], %s4789_s10 }
  0x63   : > { %s518_s26 = sadd.s32 %s3658_s4, %s5490_s17  ;;  %s510_s23 = scalar_lea.vmem [#allocation12], %s4789_s10 }
  0x64   : > { %s3659_s29 = sshll.u32 %s518_s26, 3  ;;  %p3666_p10 = scmp.ne.s32.totalorder %s4517_s24, 0 }
  0x65   : > { %s4805_s13 = scalar_lea.vmem %s5410_s7, %s3659_s29  ;;  %s4810_s9 = scalar_lea.vmem %s5460_s0, %s3659_s29 }
  0x66   : > { %545 = sbr.rel (%p3666_p10) target bundleno = 386 (0x182), region = 60  ;;  %s5462_s4 = sld [smem:[#allocation27_spill]] (!%p3666_p10) }
  0x67   : > { %s4815_s11 = scalar_lea.vmem %s5461_s1, %s3659_s29  ;;  %s5463_s15 = sld [smem:[#allocation30_spill]] (!%p3666_p10) }
  0x68   : > { %s5464_s17 = sld [smem:[#allocation28_spill]] (!%p3666_p10) }
  0x6b   : > { %vm560_vm0 = vcmask 261120   ;;  %v4539_v4 = vmov 0.0   ;;  %v546_v9 = vld [vmem:[%s4793_s16] sm:$0xff]  ;;  %v547_v10 = vld [vmem:[%s4793_s16 + $0x8] sm:$0xff]  ;;  %vm4540_vm1 = vmmov 0   ;;  %v548_v14 = vld [vmem:[%s4793_s16 + $0x10] sm:$0xff] }
  0x6c   : > { %v552_v1 = vld [vmem:[%s5462_s4 + $0x18] sm:$0xff]  ;;  %v551_v2 = vld [vmem:[%s5462_s4 + $0x10] sm:$0xff]  ;;  %v550_v3 = vld [vmem:[%s5462_s4 + $0x8] sm:$0xff]  ;;  %3843 = vmatprep.subr.mxu0 %v4539_v4  ;;  %3860 = vmatprep.subr.mxu1 %v4539_v4  ;;  %v562_v12 = vsel %vm560_vm0, %v546_v9, 0  ;;  %v565_v13 = vsel %vm560_vm0, %v547_v10, 0  ;;  %v568_v21 = vsel %vm560_vm0, %v548_v14, 0 }
  0x6d   : > { %v4830_v5 = vand.u32 4294901760, %v552_v1  ;;  %v4832_v6 = vand.u32 4294901760, %v551_v2  ;;  %v4834_v7 = vand.u32 4294901760, %v550_v3  ;;  %v549_v8 = vld [vmem:[%s5462_s4] sm:$0xff]  ;;  %3851 = vmatprep.mubr.msk.f32.mxu0 %vm4540_vm1, %v4539_v4  ;;  %3868 = vmatprep.mubr.msk.f32.mxu1 %vm4540_vm1, %v4539_v4  ;;  %v4855_v16 = vand.u32 4294901760, %v562_v12 }
  0x6e   : > { %v4842_v11 = vand.u32 4294901760, %v549_v8  ;;  %v4864_v19 = vand.u32 4294901760, %v565_v13  ;;  %v4882_v28 = vand.u32 4294901760, %v568_v21  ;;  %v4541_v43 = vmov 0   ;;  %v1144_v48 = vld [vmem:[%s5463_s15] sm:$0x1] }
  0x6f   : > { %3844 = vmatpush3.msra.mxu0 %v4830_v5  ;;  %v4853_v15 = vsub.f32 %v552_v1, %v4830_v5  ;;  %v4858_v17 = vsub.f32 %v551_v2, %v4832_v6  ;;  %v4861_v18 = vsub.f32 %v550_v3, %v4834_v7  ;;  %v4873_v23 = vsub.f32 %v562_v12, %v4855_v16  ;;  %v1145_v55 = vld [vmem:[#allocation5] sm:$0x1]  ;;  %v3667_v10 = vld [vmem:[%s5464_s17] ss:$0 sm:$0xff] }
  0x70   : > { %3845 = vmatprep.subr.mxu0 %v4539_v4  ;;  %v4867_v20 = vsub.f32 %v549_v8, %v4842_v11  ;;  %v4879_v26 = vsub.f32 %v565_v13, %v4864_v19  ;;  %v4902_v34 = vsub.f32 %v568_v21, %v4882_v28  ;;  %4306 = vset.pattern.permute.xlu0 %v4541_v43  ;;  %v1156_v49 = vsel %vm560_vm0, %v1144_v48, 0 }
  0x71   : > { %3846 = vmatpush3.msra.mxu0 %v4832_v6  ;;  %v696_v22 = vand.u32 4294901760, %v4853_v15  ;;  %v703_v24 = vand.u32 4294901760, %v4858_v17  ;;  %v710_v25 = vand.u32 4294901760, %v4861_v18  ;;  %v4889_v30 = vand.u32 4294901760, %v4873_v23  ;;  %1148 = vperm.xlu0 %4306, %v1145_v55  }
  0x72   : > { %3847 = vmatprep.subr.mxu0 %v4539_v4  ;;  %v717_v27 = vand.u32 4294901760, %v4867_v20  ;;  %v4899_v33 = vand.u32 4294901760, %v4879_v26  ;;  %v4914_v40 = vand.u32 4294901760, %v4902_v34  ;;  %v4978_v50 = vand.u32 4294901760, %v1156_v49 }
  0x73   : > { %3848 = vmatpush3.msra.mxu0 %v4834_v7  ;;  %v697_v29 = vsub.f32 %v4853_v15, %v696_v22  ;;  %v704_v31 = vsub.f32 %v4858_v17, %v703_v24  ;;  %v711_v32 = vsub.f32 %v4861_v18, %v710_v25  ;;  %v642_v36 = vsub.f32 %v4873_v23, %v4889_v30 }
  0x74   : > { %3849 = vmatprep.subr.mxu0 %v4539_v4  ;;  %v718_v38 = vsub.f32 %v4867_v20, %v717_v27  ;;  %v652_v39 = vsub.f32 %v4879_v26, %v4899_v33  ;;  %v662_v46 = vsub.f32 %v4902_v34, %v4914_v40  ;;  %v4991_v51 = vsub.f32 %v1156_v49, %v4978_v50 }
  0x75   : > { %3850 = vmatpush3.msra.mxu0 %v4842_v11  ;;  %v698_v35 = vand.u32 4294901760, %v697_v29  ;;  %v705_v37 = vand.u32 4294901760, %v704_v31  ;;  %v4916_v41 = vand.u32 4294901760, %v642_v36  ;;  %v712_v42 = vand.u32 4294901760, %v711_v32 }
  0x76   : > { %3877 = vmatprep.subr.mxu0 %v4539_v4  ;;  %v4920_v44 = vand.u32 4294901760, %v652_v39  ;;  %v719_v45 = vand.u32 4294901760, %v718_v38  ;;  %v4931_v47 = vand.u32 4294901760, %v662_v46  ;;  %v1228_v52 = vand.u32 4294901760, %v4991_v51 }
  0x77   : > { %3861 = vmatpush3.msra.mxu1 %v698_v35  ;;  %3852 = vmatmul.mubr.f32.vlgmr.msra.gmra.mxu0 %v4916_v41  ;;  %vm1630_vm2 = vcmask 188416   ;;  %v4542_v56 = vmov -inf   ;;  %v1151_v49 = vlaneseq }
  0x78   : > { %3862 = vmatprep.subr.mxu1 %v4539_v4  ;;  %3854 = vmatprep.mubr.msk.f32.mxu0 %vm4540_vm1, %v4539_v4  ;;  %v1229_v53 = vsub.f32 %v4991_v51, %v1228_v52  ;;  %1633 = vst.msk [vmem:[#allocation4] sm:$0x1] %vm1630_vm2, %v4539_v4  ;;  %1632 = vst.msk [vmem:[#allocation3] sm:$0x1] %vm1630_vm2, %v4542_v56 }
  0x79   : > { %3863 = vmatpush3.msra.mxu1 %v705_v37  ;;  %3878 = vmatpush3.msra.mxu0 %v4853_v15 }
  0x7a   : > { %3864 = vmatprep.subr.mxu1 %v4539_v4  ;;  %3879 = vmatprep.subr.mxu0 %v4539_v4  ;;  %v1230_v54 = vand.u32 4294901760, %v1229_v53 }
  0x7b   : > { %3865 = vmatpush3.msra.mxu1 %v712_v42  ;;  %3855 = vmatmul.mubr.f32.gmra.mxu0 %v4920_v44 }
  0x7c   : > { %3866 = vmatprep.subr.mxu1 %v4539_v4  ;;  %3857 = vmatprep.mubr.msk.f32.mxu0 %vm4540_vm1, %v4539_v4 }
  0x7d   : > { %3867 = vmatpush3.msra.mxu1 %v719_v45  ;;  %3880 = vmatpush3.msra.mxu0 %v4858_v17 }
  0x7e   : > { %3869 = vmatmul.mubr.f32.vlgmr.msra.gmra.mxu1 %v4855_v16  ;;  %3894 = vmatprep.subr.mxu1 %v4539_v4 }
  0x7f   : > { %3895 = vmatpush3.msra.mxu1 %v4830_v5  ;;  %3881 = vmatprep.subr.mxu0 %v4539_v4 }
  0x80   : > { %3858 = vmatmul.mubr.f32.gmra.mxu0 %v4931_v47  ;;  %3871 = vmatprep.mubr.msk.f32.mxu1 %vm4540_vm1, %v4539_v4 }
  0x81   : > { %3882 = vmatpush3.msra.mxu0 %v4861_v18  ;;  %3896 = vmatprep.subr.mxu1 %v4539_v4 }
  0x82   : > { %3872 = vmatmul.mubr.f32.gmra.mxu1 %v4864_v19  ;;  %3883 = vmatprep.subr.mxu0 %v4539_v4 }
  0x83   : > { %3897 = vmatpush3.msra.mxu1 %v4832_v6  ;;  %3884 = vmatpush3.msra.mxu0 %v4867_v20 }
  0x84   : > { %3885 = vmatprep.mubr.msk.f32.mxu0 %vm4540_vm1, %v4539_v4  ;;  %3898 = vmatprep.subr.mxu1 %v4539_v4 }
  0x85   : > { %3886 = vmatmul.mubr.f32.vlgmr.msra.gmra.mxu0 %v4873_v23  ;;  %3874 = vmatprep.mubr.msk.f32.mxu1 %vm4540_vm1, %v4539_v4 }
  0x86   : > { %3899 = vmatpush3.msra.mxu1 %v4834_v7  ;;  %3888 = vmatprep.mubr.msk.f32.mxu0 %vm4540_vm1, %v4539_v4 }
  0x87   : > { %3875 = vmatmul.mubr.f32.gmra.mxu1 %v4882_v28  ;;  %3900 = vmatprep.subr.mxu1 %v4539_v4 }
  0x88   : > { %3911 = vmatprep.subr.mxu0 %v4539_v4  ;;  %3901 = vmatpush3.msra.mxu1 %v4842_v11 }
  0x89   : > { %3889 = vmatmul.mubr.f32.gmra.mxu0 %v4879_v26  ;;  %3902 = vmatprep.mubr.msk.f32.mxu1 %vm4540_vm1, %v4539_v4 }
  0x8a   : > { %3912 = vmatpush3.msra.mxu0 %v696_v22  ;;  %3928 = vmatprep.subr.mxu1 %v4539_v4 }
  0x8b   : > { %3913 = vmatprep.subr.mxu0 %v4539_v4  ;;  %3903 = vmatmul.mubr.f32.vlgmr.msra.gmra.mxu1 %v4889_v30 }
  0x8c   : > { %3914 = vmatpush3.msra.mxu0 %v703_v24  ;;  %3891 = vmatprep.mubr.msk.f32.mxu0 %vm4540_vm1, %v4539_v4 }
  0x8d   : > { %3915 = vmatprep.subr.mxu0 %v4539_v4  ;;  %3929 = vmatpush3.msra.mxu1 %v4830_v5 }
  0x8e   : > { %3892 = vmatmul.mubr.f32.gmra.mxu0 %v4902_v34  ;;  %3905 = vmatprep.mubr.msk.f32.mxu1 %vm4540_vm1, %v4539_v4 }
  0x8f   : > { %3916 = vmatpush3.msra.mxu0 %v710_v25  ;;  %3930 = vmatprep.subr.mxu1 %v4539_v4 }
  0x90   : > { %3917 = vmatprep.subr.mxu0 %v4539_v4  ;;  %3906 = vmatmul.mubr.f32.gmra.mxu1 %v4899_v33 }
  0x91   : > { %3918 = vmatpush3.msra.mxu0 %v717_v27  ;;  %3931 = vmatpush3.msra.mxu1 %v4832_v6 }
  0x92   : > { %3919 = vmatprep.mubr.msk.f32.mxu0 %vm4540_vm1, %v4539_v4  ;;  %3945 = vmatprep.subr.mxu0 %v4539_v4 }
  0x93   : > { %3920 = vmatmul.mubr.f32.vlgmr.msra.gmra.mxu0 %v4855_v16  ;;  %3932 = vmatprep.subr.mxu1 %v4539_v4 }
  0x94   : > { %3946 = vmatpush3.xpose.msra.mxu0 %v4882_v28  ;;  %3908 = vmatprep.mubr.msk.f32.mxu1 %vm4540_vm1, %v4539_v4 }
  0x95   : > { %3933 = vmatpush3.msra.mxu1 %v4834_v7  ;;  %3922 = vmatprep.mubr.msk.f32.mxu0 %vm4540_vm1, %v4539_v4 }
  0x96   : > { %3909 = vmatmul.mubr.f32.gmra.mxu1 %v4914_v40  ;;  %3934 = vmatprep.subr.mxu1 %v4539_v4 }
  0x97   : > { %3947 = vmatprep.subr.mxu0 %v4539_v4  ;;  %3923 = vmatmul.mubr.f32.gmra.mxu0 %v4864_v19 }
  0x98   : > { %3935 = vmatpush3.msra.mxu1 %v4842_v11  ;;  %3948 = vmatpush3.xpose.msra.mxu0 %v4864_v19 }
  0x99   : > { %3936 = vmatprep.mubr.msk.f32.mxu1 %vm4540_vm1, %v4539_v4  ;;  %3954 = vmatprep.subr.mxu1 %v4539_v4 }
  0x9a   : > { %3937 = vmatmul.mubr.f32.vlgmr.msra.gmra.mxu1 %v4855_v16  ;;  %3925 = vmatprep.mubr.msk.f32.mxu0 %vm4540_vm1, %v4539_v4 }
  0x9b   : > { %3955 = vmatpush3.xpose.msra.mxu1 %v4931_v47  ;;  %3949 = vmatprep.subr.mxu0 %v4539_v4 }
  0x9c   : > { %3926 = vmatmul.mubr.f32.gmra.mxu0 %v4882_v28  ;;  %3939 = vmatprep.mubr.msk.f32.mxu1 %vm4540_vm1, %v4539_v4 }
  0x9d   : > { %3950 = vmatpush3.xpose.msra.mxu0 %v4855_v16  ;;  %3956 = vmatprep.subr.mxu1 %v4539_v4 }
  0x9e   : > { %3940 = vmatmul.mubr.f32.gmra.mxu1 %v4864_v19  ;;  %3951 = vmatprep.mubr.msk.f32.mxu0 %vm4540_vm1, %v4539_v4 }
  0x9f   : > { %3957 = vmatpush3.xpose.msra.mxu1 %v4920_v44  ;;  %3963 = vmatprep.subr.mxu0 %v4539_v4 }
  0xa0   : > { %3952 = vmatmul.mubr.f32.vlgmr.msra.gmra.mxu0 %v1230_v54  ;;  %3942 = vmatprep.mubr.msk.f32.mxu1 %vm4540_vm1, %v4539_v4 }
  0xa1   : > { %3964 = vmatpush3.xpose.msra.mxu0 %v4902_v34  ;;  %3958 = vmatprep.subr.mxu1 %v4539_v4 }
  0xa2   : > { %3943 = vmatmul.mubr.f32.gmra.mxu1 %v4882_v28  ;;  %3965 = vmatprep.subr.mxu0 %v4539_v4 }
  0xa3   : > { %3959 = vmatpush3.xpose.msra.mxu1 %v4916_v41  ;;  %3960 = vmatprep.mubr.msk.f32.mxu1 %vm4540_vm1, %v4539_v4 }
  0xa4   : > { %3972 = vmatprep.subr.mxu1 %v4539_v4  ;;  %3969 = vmatprep.mubr.msk.f32.mxu0 %vm4540_vm1, %v4539_v4 }
  0xa5   : > { %3966 = vmatpush3.xpose.msra.mxu0 %v4879_v26 }
  0xa6   : > { %3961 = vmatmul.mubr.f32.vlgmr.msra.gmra.mxu1 %v4978_v50  ;;  %3967 = vmatprep.subr.mxu0 %v4539_v4 }
  0xa7   : > { %3973 = vmatpush3.xpose.msra.mxu1 %v4882_v28  ;;  %3978 = vmatprep.mubr.msk.f32.mxu1 %vm4540_vm1, %v4539_v4 }
  0xa8   : > { %3974 = vmatprep.subr.mxu1 %v4539_v4 }
  0xa9   : > { %3968 = vmatpush3.xpose.msra.mxu0 %v4873_v23 }
  0xaa   : > { %3981 = vmatprep.subr.mxu0 %v4539_v4 }
  0xab   : > { %3975 = vmatpush3.xpose.msra.mxu1 %v4864_v19 }
  0xac   : > { %3970 = vmatmul.mubr.f32.vlgmr.msra.gmra.mxu0 %v4991_v51  ;;  %3976 = vmatprep.subr.mxu1 %v4539_v4 }
  0xad   : > { %3982 = vmatpush3.xpose.msra.mxu0 %v4914_v40  ;;  %3987 = vmatprep.mubr.msk.f32.mxu0 %vm4540_vm1, %v4539_v4 }
  0xae   : > { %3983 = vmatprep.subr.mxu0 %v4539_v4 }
  0xaf   : > { %3977 = vmatpush3.xpose.msra.mxu1 %v4855_v16 }
  0xb0   : > { %3990 = vmatprep.subr.mxu1 %v4539_v4 }
  0xb1   : > { %3984 = vmatpush3.xpose.msra.mxu0 %v4899_v33 }
  0xb2   : > { %3979 = vmatmul.mubr.f32.vlgmr.msra.gmra.mxu1 %v1228_v52  ;;  %3985 = vmatprep.subr.mxu0 %v4539_v4  ;;  %v1152_v52 = vshrl.u32 %v1151_v49, 7 }
  0xb3   : > { %3991 = vmatpush3.xpose.msra.mxu1 %v4882_v28  ;;  %3996 = vmatprep.mubr.msk.f32.mxu1 %vm4540_vm1, %v4539_v4 }
  0xb4   : > { %3992 = vmatprep.subr.mxu1 %v4539_v4  ;;  %v1153_v54 = vsub.s32 0, %v1152_v52 }
  0xb5   : > { %3986 = vmatpush3.xpose.msra.mxu0 %v4889_v30 }
  0xb7   : > { %3993 = vmatpush3.xpose.msra.mxu1 %v4864_v19 }
  0xb8   : > { %3988 = vmatmul.mubr.f32.vlgmr.msra.gmra.mxu0 %v4978_v50  ;;  %3994 = vmatprep.subr.mxu1 %v4539_v4 }
  0xbb   : > { %3995 = vmatpush3.xpose.msra.mxu1 %v4855_v16 }
  0xbe   : > { %3997 = vmatmul.mubr.f32.vlgmr.msra.gmra.mxu1 %v4978_v50 }
  0xec   : > { %v1149_v55 = vpop.permute.xlu0 %1148 }
 0x137   : > { %v645_v57 = vpop.f32.mrf.mxu0 }
 0x138   : > { %v646_v13 = vadd.f32 %v3667_v10, %v645_v57 }
 0x139   : > { %v3853_v58 = vpop.f32.mrf.mxu0 }
 0x13a   : > { %v1154_v58 = vrot.slane %v1149_v55, %v1153_v54 }
 0x13b   : > { %v655_v59 = vpop.f32.mrf.mxu0 }
 0x13c   : > { %v656_v17 = vadd.f32 %v3667_v10, %v655_v59 }
 0x13d   : > { %v3856_v61 = vpop.f32.mrf.mxu0 }
 0x13e   : > { %v756_v60 = vpop.f32.mrf.mxu1 }
 0x13f   : > { %v757_v18 = vadd.f32 %v756_v60, %v646_v13 }
 0x140   : > { %v3870_v62 = vpop.f32.mrf.mxu1  ;;  %v665_v63 = vpop.f32.mrf.mxu0 }
 0x141   : > { %v666_v23 = vadd.f32 %v3667_v10, %v665_v63 }
 0x142   : > { %v3859_v0 = vpop.f32.mrf.mxu0  ;;  %v762_v1 = vpop.f32.mrf.mxu1 }
 0x143   : > { %v763_v24 = vadd.f32 %v762_v1, %v656_v17 }
 0x144   : > { %v3873_v2 = vpop.f32.mrf.mxu1 }
 0x145   : > { %v848_v3 = vpop.f32.mrf.mxu0 }
 0x146   : > { %v849_v20 = vadd.f32 %v848_v3, %v757_v18 }
 0x147   : > { %v768_v5 = vpop.f32.mrf.mxu1  ;;  %v3887_v6 = vpop.f32.mrf.mxu0 }
 0x148   : > { %v769_v32 = vadd.f32 %v768_v5, %v666_v23 }
 0x149   : > { %v3876_v7 = vpop.f32.mrf.mxu1  ;;  %v855_v8 = vpop.f32.mrf.mxu0 }
 0x14a   : > { %v856_v28 = vadd.f32 %v855_v8, %v763_v24 }
 0x14b   : > { %v3890_v9 = vpop.f32.mrf.mxu0  ;;  %v939_v4 = vpop.f32.mrf.mxu1 }
 0x14c   : > { %v940_v25 = vadd.f32 %v939_v4, %v849_v20 }
 0x14d   : > { %v3904_v11 = vpop.f32.mrf.mxu1 }
 0x14e   : > { %v862_v12 = vpop.f32.mrf.mxu0 }
 0x14f   : > { %v863_v37 = vadd.f32 %v862_v12, %v769_v32 }
 0x150   : > { %v3893_v14 = vpop.f32.mrf.mxu0  ;;  %v947_v15 = vpop.f32.mrf.mxu1 }
 0x151   : > { %v948_v33 = vadd.f32 %v947_v15, %v856_v28 }
 0x152   : > { %v3907_v16 = vpop.f32.mrf.mxu1 }
 0x153   : > { %v1038_v19 = vpop.f32.mrf.mxu0 }
 0x154   : > { %v1039_v29 = vadd.f32 %v1038_v19, %v940_v25 }
 0x155   : > { %v3921_v21 = vpop.f32.mrf.mxu0 }
 0x156   : > { %v955_v22 = vpop.f32.mrf.mxu1 }
 0x157   : > { %v1044_v26 = vpop.f32.mrf.mxu0  ;;  %v956_v41 = vadd.f32 %v955_v22, %v863_v37 }
 0x158   : > { %v3910_v27 = vpop.f32.mrf.mxu1  ;;  %v1045_v38 = vadd.f32 %v1044_v26, %v948_v33 }
 0x159   : > { %v3924_v30 = vpop.f32.mrf.mxu0 }
 0x15a   : > { %v1125_v31 = vpop.f32.mrf.mxu1 }
 0x15b   : > { %v1126_v34 = vadd.f32 %v1125_v31, %v1039_v29 }
 0x15c   : > { %v1050_v35 = vpop.f32.mrf.mxu0  ;;  %v3938_v36 = vpop.f32.mrf.mxu1 }
 0x15d   : > { %1141 = vst.msk [vmem:[#allocation2] sm:$0xff] %vm560_vm0, %v1126_v34  ;;  %v1051_v45 = vadd.f32 %v1050_v35, %v956_v41 }
 0x15e   : > { %v1131_v39 = vpop.f32.mrf.mxu1  ;;  %v3927_v40 = vpop.f32.mrf.mxu0 }
 0x15f   : > { %v1132_v42 = vadd.f32 %v1131_v39, %v1045_v38 }
 0x160   : > { %v3941_v43 = vpop.f32.mrf.mxu1  ;;  %v1232_v44 = vpop.f32.mrf.mxu0 }
 0x161   : > { %1142 = vst.msk [vmem:[#allocation2 + $0x8] sm:$0xff] %vm560_vm0, %v1132_v42  ;;  %v1233_v60 = vadd.f32 %v1232_v44, %v1154_v58 }
 0x162   : > { %v1137_v46 = vpop.f32.mrf.mxu1  ;;  %v3953_v47 = vpop.f32.mrf.mxu0 }
 0x163   : > { %v1138_v48 = vadd.f32 %v1137_v46, %v1051_v45 }
 0x164   : > { %v3944_v50 = vpop.f32.mrf.mxu1 }
 0x165   : > { %1143 = vst.msk [vmem:[#allocation2 + $0x10] sm:$0xff] %vm560_vm0, %v1138_v48 }
 0x166   : > { %v1318_v51 = vpop.f32.mrf.mxu1 }
 0x167   : > { %v1319_v62 = vadd.f32 %v1318_v51, %v1233_v60 }
 0x168   : > { %v3962_v53 = vpop.f32.mrf.mxu1 }
 0x16c   : > { %v1396_v56 = vpop.f32.mrf.mxu0 }
 0x16d   : > { %v1397_v0 = vadd.f32 %v1396_v56, %v1319_v62 }
 0x16e   : > { %v3971_v57 = vpop.f32.mrf.mxu0 }
 0x172   : > { %v1472_v59 = vpop.f32.mrf.mxu1 }
 0x173   : > { %v1473_v2 = vadd.f32 %v1472_v59, %v1397_v0 }
 0x174   : > { %v3980_v61 = vpop.f32.mrf.mxu1 }
 0x178   : > { %v1552_v63 = vpop.f32.mrf.mxu0 }
 0x179   : > { %v1553_v3 = vadd.f32 %v1552_v63, %v1473_v2 }
 0x17a   : > { %v3989_v1 = vpop.f32.mrf.mxu0 }
 0x17e   : > { %v1626_v5 = vpop.f32.mrf.mxu1 }
 0x17f   : > { %v1627_v6 = vadd.f32 %v1626_v5, %v1553_v3 }
 0x180   : > { %v3998_v7 = vpop.f32.mrf.mxu1 }
 0x181   : > { %1631 = vst.msk [vmem:[%s504_s6] sm:$0x1] %vm1630_vm2, %v1627_v6 }
 0x182 PF: > { %s5465_s26 = sld [smem:[#allocation27_spill]]  ;;  %vm1647_vm3 = vcmask 261120   ;;  %s5466_s29 = scalar_lea.vmem [#allocation6], %s4781_s8  ;;  %v2184_v45 = vld [vmem:[#allocation2 + $0x10] sm:$0xff]  ;;  %v2183_v49 = vld [vmem:[#allocation2 + $0x8] sm:$0xff]  ;;  %v2182_v55 = vld [vmem:[#allocation2] sm:$0xff] }
 0x183   : > { %v1634_v14 = vld [vmem:[%s5466_s29] sm:$0xff]  ;;  %s5467_s15 = smov %s5466_s29  ;;  %v2198_v46 = vsel %vm1647_vm3, %v2184_v45, 0  ;;  %v2195_v50 = vsel %vm1647_vm3, %v2183_v49, 0  ;;  %v2192_v56 = vsel %vm1647_vm3, %v2182_v55, 0  ;;  %s5468_s3 = sld [smem:[#allocation28_spill]]  ;;  %vm2715_vm4 = vcmask 195584  }
 0x184   : > { %v1635_v15 = vld [vmem:[%s5467_s15 + $0x8] sm:$0xff]  ;;  %v1649_v17 = vsel %vm1647_vm3, %v1634_v14, 0  ;;  %v5178_v47 = vand.u32 4294901760, %v2198_v46  ;;  %v5189_v52 = vand.u32 4294901760, %v2195_v50  ;;  %v5202_v59 = vand.u32 4294901760, %v2192_v56  ;;  %s5469_s4 = sld [smem:[#allocation29_spill]] }
 0x185   : > { %v1652_v18 = vsel %vm1647_vm3, %v1635_v15, 0  ;;  %v5115_v20 = vand.u32 4294901760, %v1649_v17  ;;  %vm3322_vm5 = vcmask 188416   ;;  %vm3257_vm6 = vcmask 7168   ;;  %p3670_p2 = scmp.ne.s32.totalorder %s4517_s24, 1 }
 0x186   : > { %v5118_v22 = vand.u32 4294901760, %v1652_v18  ;;  %v5181_v48 = vsub.f32 %v2198_v46, %v5178_v47  ;;  %v5194_v54 = vsub.f32 %v2195_v50, %v5189_v52  ;;  %v5207_v61 = vsub.f32 %v2192_v56, %v5202_v59 }
 0x187   : > { %v5125_v26 = vsub.f32 %v1649_v17, %v5115_v20  ;;  %4018 = vmatprep.mubr.f32.mxu1 %v5115_v20 }
 0x188   : > { %v1639_v8 = vld [vmem:[%s5465_s26 + $0x18] sm:$0xff]  ;;  %v1638_v9 = vld [vmem:[%s5465_s26 + $0x10] sm:$0xff]  ;;  %v1637_v4 = vld [vmem:[%s5465_s26 + $0x8] sm:$0xff]  ;;  %v5128_v28 = vsub.f32 %v1652_v18, %v5118_v22  ;;  %v5187_v51 = vand.u32 4294901760, %v5181_v48  ;;  %v5200_v58 = vand.u32 4294901760, %v5194_v54  ;;  %v5212_v63 = vand.u32 4294901760, %v5207_v61 }
 0x189   : > { %v5096_v10 = vand.u32 4294901760, %v1639_v8  ;;  %v5098_v11 = vand.u32 4294901760, %v1638_v9  ;;  %v5100_v12 = vand.u32 4294901760, %v1637_v4  ;;  %v1636_v13 = vld [vmem:[%s5465_s26] sm:$0xff]  ;;  %v5134_v32 = vand.u32 4294901760, %v5125_v26 }
 0x18a   : > { %v5109_v16 = vand.u32 4294901760, %v1636_v13  ;;  %v5137_v34 = vand.u32 4294901760, %v5128_v28  ;;  %v2318_v53 = vsub.f32 %v5181_v48, %v5187_v51  ;;  %v2325_v60 = vsub.f32 %v5194_v54, %v5200_v58  ;;  %v3668_v3 = vld [vmem:[%s5468_s3] ss:$0 sm:$0xff]  ;;  %v2719_v49 = vld [vmem:[%s5469_s4 + $0x8] sm:$0xff] }
 0x18b   : > { %3999 = vmatprep.subr.mxu0 %v5096_v10  ;;  %v1769_v19 = vsub.f32 %v1639_v8, %v5096_v10  ;;  %v1776_v21 = vsub.f32 %v1638_v9, %v5098_v11  ;;  %v1783_v23 = vsub.f32 %v1637_v4, %v5100_v12  ;;  %v1726_v38 = vsub.f32 %v5125_v26, %v5134_v32 }
 0x18c   : > { %4000 = vmatpush3.msra.mxu0 %v5096_v10  ;;  %v1790_v24 = vsub.f32 %v1636_v13, %v5109_v16  ;;  %v1736_v40 = vsub.f32 %v5128_v28, %v5137_v34  ;;  %v2319_v57 = vand.u32 4294901760, %v2318_v53  ;;  %v2326_v62 = vand.u32 4294901760, %v2325_v60 }
 0x18d   : > { %4001 = vmatprep.subr.mxu0 %v5098_v11  ;;  %v1770_v25 = vand.u32 4294901760, %v1769_v19  ;;  %v1777_v27 = vand.u32 4294901760, %v1776_v21  ;;  %v1784_v29 = vand.u32 4294901760, %v1783_v23  ;;  %v5146_v41 = vand.u32 4294901760, %v1726_v38 }
 0x18e   : > { %4002 = vmatpush3.msra.mxu0 %v5098_v11  ;;  %v1791_v30 = vand.u32 4294901760, %v1790_v24  ;;  %v5148_v42 = vand.u32 4294901760, %v1736_v40  ;;  %v2332_v0 = vsub.f32 %v5207_v61, %v5212_v63 }
 0x18f   : > { %4003 = vmatprep.subr.mxu0 %v5100_v12  ;;  %v1771_v31 = vsub.f32 %v1769_v19, %v1770_v25  ;;  %v1778_v33 = vsub.f32 %v1776_v21, %v1777_v27  ;;  %v1785_v35 = vsub.f32 %v1783_v23, %v1784_v29  ;;  %4007 = vmatprep.mubr.f32.mxu0 %v5146_v41 }
 0x190   : > { %4004 = vmatpush3.msra.mxu0 %v5100_v12  ;;  %v1792_v36 = vsub.f32 %v1790_v24, %v1791_v30  ;;  %v2333_v1 = vand.u32 4294901760, %v2332_v0 }
 0x191   : > { %4005 = vmatprep.subr.mxu0 %v5109_v16  ;;  %v1772_v37 = vand.u32 4294901760, %v1771_v31  ;;  %v1779_v39 = vand.u32 4294901760, %v1778_v33  ;;  %v1786_v43 = vand.u32 4294901760, %v1785_v35 }
 0x192   : > { %4006 = vmatpush3.msra.mxu0 %v5109_v16  ;;  %v1793_v44 = vand.u32 4294901760, %v1792_v36 }
 0x193   : > { %4010 = vmatprep.subr.mxu1 %v1772_v37  ;;  %4021 = vmatprep.subr.mxu0 %v1769_v19 }
 0x194   : > { %4011 = vmatpush3.msra.mxu1 %v1772_v37  ;;  %4008 = vmatmul.mubr.f32.vlgmr.msra.gmra.mxu0 %v5148_v42 }
 0x195   : > { %4012 = vmatprep.subr.mxu1 %v1779_v39  ;;  %4022 = vmatpush3.msra.mxu0 %v1769_v19 }
 0x196   : > { %4013 = vmatpush3.msra.mxu1 %v1779_v39  ;;  %4023 = vmatprep.subr.mxu0 %v1776_v21 }
 0x197   : > { %4014 = vmatprep.subr.mxu1 %v1786_v43  ;;  %4024 = vmatpush3.msra.mxu0 %v1776_v21 }
 0x198   : > { %4015 = vmatpush3.msra.mxu1 %v1786_v43  ;;  %4025 = vmatprep.subr.mxu0 %v1783_v23 }
 0x199   : > { %4016 = vmatprep.subr.mxu1 %v1793_v44  ;;  %4026 = vmatpush3.msra.mxu0 %v1783_v23 }
 0x19a   : > { %4017 = vmatpush3.msra.mxu1 %v1793_v44  ;;  %4027 = vmatprep.subr.mxu0 %v1790_v24 }
 0x19b   : > { %4019 = vmatmul.mubr.f32.vlgmr.msra.gmra.mxu1 %v5118_v22  ;;  %4032 = vmatprep.subr.mxu1 %v5096_v10 }
 0x19c   : > { %4028 = vmatpush3.msra.mxu0 %v1790_v24  ;;  %4029 = vmatprep.mubr.f32.mxu0 %v5125_v26 }
 0x19d   : > { %4033 = vmatpush3.msra.mxu1 %v5096_v10  ;;  %4030 = vmatmul.mubr.f32.vlgmr.msra.gmra.mxu0 %v5128_v28 }
 0x19e   : > { %4034 = vmatprep.subr.mxu1 %v5098_v11  ;;  %4043 = vmatprep.subr.mxu0 %v1770_v25 }
 0x19f   : > { %4035 = vmatpush3.msra.mxu1 %v5098_v11  ;;  %4044 = vmatpush3.msra.mxu0 %v1770_v25 }
 0x1a0   : > { %4036 = vmatprep.subr.mxu1 %v5100_v12  ;;  %4045 = vmatprep.subr.mxu0 %v1777_v27 }
 0x1a1   : > { %4037 = vmatpush3.msra.mxu1 %v5100_v12  ;;  %4046 = vmatpush3.msra.mxu0 %v1777_v27 }
 0x1a2   : > { %4038 = vmatprep.subr.mxu1 %v5109_v16  ;;  %4047 = vmatprep.subr.mxu0 %v1784_v29 }
 0x1a3   : > { %4039 = vmatpush3.msra.mxu1 %v5109_v16  ;;  %4040 = vmatprep.mubr.f32.mxu1 %v5134_v32 }
 0x1a4   : > { %4048 = vmatpush3.msra.mxu0 %v1784_v29  ;;  %4041 = vmatmul.mubr.f32.vlgmr.msra.gmra.mxu1 %v5137_v34 }
 0x1a5   : > { %4049 = vmatprep.subr.mxu0 %v1791_v30  ;;  %4054 = vmatprep.subr.mxu1 %v5096_v10 }
 0x1a6   : > { %4050 = vmatpush3.msra.mxu0 %v1791_v30  ;;  %4051 = vmatprep.mubr.f32.mxu0 %v5115_v20 }
 0x1a7   : > { %4055 = vmatpush3.msra.mxu1 %v5096_v10  ;;  %4052 = vmatmul.mubr.f32.vlgmr.msra.gmra.mxu0 %v5118_v22 }
 0x1a8   : > { %4056 = vmatprep.subr.mxu1 %v5098_v11  ;;  %4062 = vmatprep.mubr.f32.mxu1 %v5115_v20 }
 0x1a9   : > { %4057 = vmatpush3.msra.mxu1 %v5098_v11  ;;  %4065 = vmatprep.subr.mxu0 %v5178_v47 }
 0x1aa   : > { %4058 = vmatprep.subr.mxu1 %v5100_v12  ;;  %4066 = vmatpush3.xpose.msra.mxu0 %v5178_v47 }
 0x1ab   : > { %4059 = vmatpush3.msra.mxu1 %v5100_v12  ;;  %4067 = vmatprep.subr.mxu0 %v5189_v52 }
 0x1ac   : > { %4060 = vmatprep.subr.mxu1 %v5109_v16 }
 0x1ad   : > { %4061 = vmatpush3.msra.mxu1 %v5109_v16 }
 0x1ae   : > { %4063 = vmatmul.mubr.f32.vlgmr.msra.gmra.mxu1 %v5118_v22  ;;  %4068 = vmatpush3.xpose.msra.mxu0 %v5189_v52 }
 0x1af   : > { %4074 = vmatprep.subr.mxu1 %v2319_v57  ;;  %4069 = vmatprep.subr.mxu0 %v5202_v59 }
 0x1b0   : > { %4075 = vmatpush3.xpose.msra.mxu1 %v2319_v57 }
 0x1b1   : > { %4076 = vmatprep.subr.mxu1 %v2326_v62 }
 0x1b2   : > { %4070 = vmatpush3.xpose.msra.mxu0 %v5202_v59 }
 0x1b3   : > { %4083 = vmatprep.subr.mxu0 %v5181_v48 }
 0x1b4   : > { %4077 = vmatpush3.xpose.msra.mxu1 %v2326_v62 }
 0x1b5   : > { %4078 = vmatprep.subr.mxu1 %v2333_v1 }
 0x1b8   : > { %4079 = vmatpush3.xpose.msra.mxu1 %v2333_v1 }
 0x1b9   : > { %4092 = vmatprep.subr.mxu1 %v5178_v47 }
 0x254   : > { %v4009_v2 = vpop.f32.mrf.mxu0 }
 0x255   : > { %v1740_v7 = vadd.f32 %v4009_v2, %v3668_v3 }
 0x256   : > { %v1729_v5 = vpop.f32.mrf.mxu0 }
 0x257   : > { %v1730_v8 = vadd.f32 %v3668_v3, %v1729_v5 }
 0x25b   : > { %v4020_v6 = vpop.f32.mrf.mxu1 }
 0x25c   : > { %v1837_v10 = vadd.f32 %v4020_v6, %v1740_v7 }
 0x25d   : > { %v1830_v9 = vpop.f32.mrf.mxu1  ;;  %v4031_v4 = vpop.f32.mrf.mxu0 }
 0x25e   : > { %v1831_v12 = vadd.f32 %v1830_v9, %v1730_v8  ;;  %v1924_v14 = vadd.f32 %v4031_v4, %v1837_v10 }
 0x25f   : > { %v1916_v13 = vpop.f32.mrf.mxu0 }
 0x260   : > { %v1917_v17 = vadd.f32 %v1916_v13, %v1831_v12 }
 0x264   : > { %v4042_v11 = vpop.f32.mrf.mxu1 }
 0x265   : > { %v2009_v18 = vadd.f32 %v4042_v11, %v1924_v14 }
 0x266   : > { %v2000_v15 = vpop.f32.mrf.mxu1 }
 0x267   : > { %v4053_v16 = vpop.f32.mrf.mxu0  ;;  %v2001_v19 = vadd.f32 %v2000_v15, %v1917_v17 }
 0x268   : > { %v2098_v23 = vadd.f32 %v4053_v16, %v2009_v18 }
 0x269   : > { %v2091_v21 = vpop.f32.mrf.mxu0 }
 0x26a   : > { %v2092_v25 = vadd.f32 %v2091_v21, %v2001_v19 }
 0x26e   : > { %v4064_v24 = vpop.f32.mrf.mxu1 }
 0x26f   : > { %v2179_v27 = vadd.f32 %v4064_v24, %v2098_v23 }
 0x270   : > { %v2172_v29 = vpop.f32.mrf.mxu1 }
 0x271   : > { %v2189_v30 = vsel %vm1647_vm3, %v2179_v27, 0  ;;  %v2173_v31 = vadd.f32 %v2172_v29, %v2092_v25  ;;  %v3301_v29 = vlaneseq }
 0x272   : > { %v2278_v33 = vand.u32 4294901760, %v2189_v30 }
 0x273   : > { %v2186_v35 = vsel %vm1647_vm3, %v2173_v31, 0 }
 0x274   : > { %v2279_v36 = vsub.f32 %v2189_v30, %v2278_v33  ;;  %v2268_v37 = vand.u32 4294901760, %v2186_v35 }
 0x276   : > { %v2280_v38 = vand.u32 4294901760, %v2279_v36  ;;  %v2269_v39 = vsub.f32 %v2186_v35, %v2268_v37  ;;  %4080 = vmatprep.mubr.f32.mxu1 %v2268_v37 }
 0x277   : > { %4081 = vmatmul.mubr.f32.vlgmr.msra.gmra.mxu1 %v2278_v33 }
 0x278   : > { %4093 = vmatpush3.xpose.msra.mxu1 %v5178_v47  ;;  %v2270_v40 = vand.u32 4294901760, %v2269_v39  ;;  %v2281_v43 = vsub.f32 %v2279_v36, %v2280_v38 }
 0x279   : > { %4094 = vmatprep.subr.mxu1 %v5189_v52 }
 0x27a   : > { %4098 = vmatprep.mubr.f32.mxu1 %v2270_v40  ;;  %v2271_v44 = vsub.f32 %v2269_v39, %v2270_v40  ;;  %v2282_v46 = vand.u32 4294901760, %v2281_v43 }
 0x27c   : > { %4095 = vmatpush3.xpose.msra.mxu1 %v5189_v52  ;;  %v2272_v45 = vand.u32 4294901760, %v2271_v44 }
 0x27d   : > { %4096 = vmatprep.subr.mxu1 %v5202_v59 }
 0x27e   : > { %4071 = vmatprep.mubr.f32.mxu0 %v2272_v45 }
 0x27f   : > { %4072 = vmatmul.mubr.f32.vlgmr.msra.gmra.mxu0 %v2282_v46 }
 0x280   : > { %4084 = vmatpush3.xpose.msra.mxu0 %v5181_v48  ;;  %4097 = vmatpush3.xpose.msra.mxu1 %v5202_v59  ;;  %v2720_v48 = vld [vmem:[%s5469_s4 + $0x10] sm:$0xff] }
 0x281   : > { %4089 = vmatprep.mubr.f32.mxu0 %v2269_v39  ;;  %4085 = vmatprep.subr.mxu0 %v5194_v54 }
 0x282   : > { %4110 = vmatprep.subr.mxu1 %v5178_v47 }
 0x283   : > { %4099 = vmatmul.mubr.f32.vlgmr.msra.gmra.mxu1 %v2280_v38 }
 0x284   : > { %4086 = vmatpush3.xpose.msra.mxu0 %v5194_v54  ;;  %4111 = vmatpush3.xpose.msra.mxu1 %v5178_v47  ;;  %v2721_v47 = vld [vmem:[%s5469_s4 + $0x18] sm:$0xff] }
 0x285   : > { %4116 = vmatprep.mubr.f32.mxu1 %v2268_v37  ;;  %4087 = vmatprep.subr.mxu0 %v5207_v61  ;;  %v5256_v50 = vand.u32 4294901760, %v2721_v47 }
 0x286   : > { %4112 = vmatprep.subr.mxu1 %v5189_v52 }
 0x287   : > { %v2844_v54 = vsub.f32 %v2721_v47, %v5256_v50 }
 0x288   : > { %4088 = vmatpush3.xpose.msra.mxu0 %v5207_v61  ;;  %4113 = vmatpush3.xpose.msra.mxu1 %v5189_v52  ;;  %v5260_v52 = vand.u32 4294901760, %v2719_v49 }
 0x289   : > { %4101 = vmatprep.subr.mxu0 %v5187_v51  ;;  %4114 = vmatprep.subr.mxu1 %v5202_v59 }
 0x28a   : > { %v2858_v56 = vsub.f32 %v2719_v49, %v5260_v52 }
 0x28b   : > { %4090 = vmatmul.mubr.f32.vlgmr.msra.gmra.mxu0 %v2279_v36 }
 0x28c   : > { %4102 = vmatpush3.xpose.msra.mxu0 %v5187_v51  ;;  %4107 = vmatprep.mubr.f32.mxu0 %v2268_v37  ;;  %v5258_v51 = vand.u32 4294901760, %v2720_v48  ;;  %v2859_v60 = vand.u32 4294901760, %v2858_v56  ;;  %v3286_v37 = vld [vmem:[#allocation3] sm:$0x1] }
 0x28d   : > { %4115 = vmatpush3.xpose.msra.mxu1 %v5202_v59  ;;  %4103 = vmatprep.subr.mxu0 %v5200_v58 }
 0x28e   : > { %v2851_v55 = vsub.f32 %v2720_v48, %v5258_v51  ;;  %v2860_v0 = vsub.f32 %v2858_v56, %v2859_v60 }
 0x290   : > { %4117 = vmatmul.mubr.f32.vlgmr.msra.gmra.mxu1 %v2278_v33  ;;  %4104 = vmatpush3.xpose.msra.mxu0 %v5200_v58  ;;  %v2845_v58 = vand.u32 4294901760, %v2844_v54  ;;  %v2852_v59 = vand.u32 4294901760, %v2851_v55  ;;  %v2861_v5 = vand.u32 4294901760, %v2860_v0 }
 0x291   : > { %4105 = vmatprep.subr.mxu0 %v5212_v63  ;;  %4138 = vmatprep.mubr.f32.mxu1 %v5115_v20 }
 0x292   : > { %v2846_v62 = vsub.f32 %v2844_v54, %v2845_v58 }
 0x294   : > { %4106 = vmatpush3.xpose.msra.mxu0 %v5212_v63  ;;  %v2853_v63 = vsub.f32 %v2851_v55, %v2852_v59  ;;  %v2847_v1 = vand.u32 4294901760, %v2846_v62 }
 0x295   : > { %4119 = vmatprep.subr.mxu0 %v5256_v50 }
 0x296   : > { %v2854_v2 = vand.u32 4294901760, %v2853_v63  ;;  %4130 = vmatprep.subr.mxu1 %v2847_v1 }
 0x297   : > { %4108 = vmatmul.mubr.f32.vlgmr.msra.gmra.mxu0 %v2278_v33  ;;  %4131 = vmatpush3.msra.mxu1 %v2847_v1  ;;  %v3302_v33 = vshrl.u32 %v3301_v29, 7 }
 0x298   : > { %4127 = vmatprep.mubr.f32.mxu0 %v5146_v41  ;;  %v2718_v41 = vld [vmem:[%s5469_s4] sm:$0xff]  ;;  %4120 = vmatpush3.msra.mxu0 %v5256_v50 }
 0x299   : > { %v5265_v53 = vand.u32 4294901760, %v2718_v41  ;;  %4121 = vmatprep.subr.mxu0 %v5258_v51  ;;  %4132 = vmatprep.subr.mxu1 %v2854_v2  ;;  %v3303_v38 = vsub.s32 0, %v3302_v33 }
 0x29a   : > { %4122 = vmatpush3.msra.mxu0 %v5258_v51  ;;  %4133 = vmatpush3.msra.mxu1 %v2854_v2 }
 0x29b   : > { %v2865_v57 = vsub.f32 %v2718_v41, %v5265_v53  ;;  %4123 = vmatprep.subr.mxu0 %v5260_v52  ;;  %4134 = vmatprep.subr.mxu1 %v2861_v5 }
 0x29c   : > { %4124 = vmatpush3.msra.mxu0 %v5260_v52  ;;  %4135 = vmatpush3.msra.mxu1 %v2861_v5 }
 0x29d   : > { %v2866_v61 = vand.u32 4294901760, %v2865_v57  ;;  %4125 = vmatprep.subr.mxu0 %v5265_v53 }
 0x29e   : > { %4126 = vmatpush3.msra.mxu0 %v5265_v53 }
 0x29f   : > { %v2867_v3 = vsub.f32 %v2865_v57, %v2866_v61  ;;  %4141 = vmatprep.subr.mxu0 %v2844_v54  ;;  %4128 = vmatmul.mubr.f32.vlgmr.msra.gmra.mxu0 %v5148_v42 }
 0x2a0   : > { %4142 = vmatpush3.msra.mxu0 %v2844_v54  ;;  %4149 = vmatprep.mubr.f32.mxu0 %v5125_v26 }
 0x2a1   : > { %v2868_v6 = vand.u32 4294901760, %v2867_v3  ;;  %4143 = vmatprep.subr.mxu0 %v2851_v55 }
 0x2a2   : > { %4144 = vmatpush3.msra.mxu0 %v2851_v55 }
 0x2a3   : > { %4145 = vmatprep.subr.mxu0 %v2858_v56  ;;  %4136 = vmatprep.subr.mxu1 %v2868_v6 }
 0x2a4   : > { %4146 = vmatpush3.msra.mxu0 %v2858_v56  ;;  %4137 = vmatpush3.msra.mxu1 %v2868_v6 }
 0x2a5   : > { %4147 = vmatprep.subr.mxu0 %v2865_v57  ;;  %4152 = vmatprep.subr.mxu1 %v5256_v50 }
 0x2a6   : > { %4139 = vmatmul.mubr.f32.vlgmr.msra.gmra.mxu1 %v5118_v22  ;;  %4148 = vmatpush3.msra.mxu0 %v2865_v57 }
 0x2a7   : > { %4153 = vmatpush3.msra.mxu1 %v5256_v50  ;;  %4163 = vmatprep.subr.mxu0 %v2845_v58 }
 0x2a8   : > { %4154 = vmatprep.subr.mxu1 %v5258_v51  ;;  %4150 = vmatmul.mubr.f32.vlgmr.msra.gmra.mxu0 %v5128_v28 }
 0x2a9   : > { %4155 = vmatpush3.msra.mxu1 %v5258_v51  ;;  %4164 = vmatpush3.msra.mxu0 %v2845_v58 }
 0x2aa   : > { %4156 = vmatprep.subr.mxu1 %v5260_v52  ;;  %4160 = vmatprep.mubr.f32.mxu1 %v5134_v32 }
 0x2ab   : > { %4157 = vmatpush3.msra.mxu1 %v5260_v52  ;;  %4165 = vmatprep.subr.mxu0 %v2852_v59 }
 0x2ac   : > { %4158 = vmatprep.subr.mxu1 %v5265_v53  ;;  %4166 = vmatpush3.msra.mxu0 %v2852_v59  ;;  %v3295_v59 = vld [vmem:[#allocation4] sm:$0x1] }
 0x2ad   : > { %4159 = vmatpush3.msra.mxu1 %v5265_v53  ;;  %4167 = vmatprep.subr.mxu0 %v2859_v60 }
 0x2ae   : > { %4174 = vmatprep.subr.mxu1 %v5256_v50  ;;  %4161 = vmatmul.mubr.f32.vlgmr.msra.gmra.mxu1 %v5137_v34 }
 0x2af   : > { %4175 = vmatpush3.msra.mxu1 %v5256_v50  ;;  %4168 = vmatpush3.msra.mxu0 %v2859_v60 }
 0x2b0   : > { %4176 = vmatprep.subr.mxu1 %v5258_v51  ;;  %4169 = vmatprep.subr.mxu0 %v2866_v61 }
 0x2b1   : > { %4177 = vmatpush3.msra.mxu1 %v5258_v51  ;;  %4170 = vmatpush3.msra.mxu0 %v2866_v61 }
 0x2b2   : > { %4178 = vmatprep.subr.mxu1 %v5260_v52  ;;  %4171 = vmatprep.mubr.f32.mxu0 %v5115_v20 }
 0x2b3   : > { %4179 = vmatpush3.msra.mxu1 %v5260_v52  ;;  %4172 = vmatmul.mubr.f32.vlgmr.msra.gmra.mxu0 %v5118_v22 }
 0x2b4   : > { %4180 = vmatprep.subr.mxu1 %v5265_v53  ;;  %4182 = vmatprep.mubr.f32.mxu1 %v5115_v20 }
 0x2b5   : > { %4181 = vmatpush3.msra.mxu1 %v5265_v53 }
 0x2b6   : > { %4183 = vmatmul.mubr.f32.vlgmr.msra.gmra.mxu1 %v5118_v22 }
 0x337   : > { %v4082_v28 = vpop.f32.mrf.mxu1 }
 0x339   : > { %v2370_v42 = vpop.f32.mrf.mxu1 }
 0x33f   : > { %v4073_v26 = vpop.f32.mrf.mxu0 }
 0x340   : > { %v2377_v7 = vadd.f32 %v4082_v28, %v4073_v26 }
 0x341   : > { %v2274_v32 = vpop.f32.mrf.mxu0 }
 0x342   : > { %v2371_v4 = vadd.f32 %v2370_v42, %v2274_v32 }
 0x343   : > { %v4100_v8 = vpop.f32.mrf.mxu1 }
 0x345   : > { %v2537_v12 = vpop.f32.mrf.mxu1 }
 0x34b   : > { %v4091_v34 = vpop.f32.mrf.mxu0 }
 0x34c   : > { %v2462_v10 = vadd.f32 %v4091_v34, %v2377_v7  ;;  %v3669_v7 = vld [vmem:[#allocation5] ss:$0 sm:$0xff] }
 0x34d   : > { %v2454_v9 = vpop.f32.mrf.mxu0 }
 0x34e   : > { %v2455_v11 = vadd.f32 %v2454_v9, %v2371_v4  ;;  %v2546_v13 = vadd.f32 %v4100_v8, %v2462_v10 }
 0x350   : > { %v4118_v20 = vpop.f32.mrf.mxu1  ;;  %v2538_v16 = vadd.f32 %v2537_v12, %v2455_v11 }
 0x352   : > { %v2705_v19 = vpop.f32.mrf.mxu1 }
 0x357   : > { %v4109_v14 = vpop.f32.mrf.mxu0 }
 0x358   : > { %v2632_v15 = vadd.f32 %v4109_v14, %v2546_v13 }
 0x359   : > { %v2625_v22 = vpop.f32.mrf.mxu0 }
 0x35a   : > { %v2712_v17 = vadd.f32 %v4118_v20, %v2632_v15  ;;  %v2626_v18 = vadd.f32 %v2625_v22, %v2538_v16 }
 0x35c   : > { %2717 = vst.msk [vmem:[%s4805_s13 + $0x8] sm:$0xff] %vm2715_vm4, %v2712_v17  ;;  %v2706_v21 = vadd.f32 %v2705_v19, %v2626_v18  ;;  %v3263_v24 = vsel %vm2715_vm4, %v2712_v17, -inf }
 0x35e   : > { %2716 = vst.msk [vmem:[%s4805_s13] sm:$0xff] %vm2715_vm4, %v2706_v21  ;;  %v3260_v23 = vsel %vm2715_vm4, %v2706_v21, -inf }
 0x35f   : > { %3261 = vmax.xlane.f32.xlu0 %v3260_v23  ;;  %v3287_v25 = vmax.f32 %v3260_v23, %v3263_v24  ;;  %v4129_v42 = vpop.f32.mrf.mxu0 }
 0x360   : > { %v2815_v8 = vadd.f32 %v4129_v42, %v3669_v7 }
 0x361   : > { %v3288_v27 = vrot.slane %v3287_v25, 4  ;;  %v2804_v9 = vpop.f32.mrf.mxu0 }
 0x362   : > { %v2805_v10 = vadd.f32 %v3669_v7, %v2804_v9 }
 0x363   : > { %3264 = vmax.xlane.f32.xlu0 %v3263_v24  ;;  %v3289_v30 = vmax.f32 %v3287_v25, %v3288_v27 }
 0x365   : > { %v3290_v31 = vrot.slane %v3289_v30, 2 }
 0x366   : > { %v4140_v4 = vpop.f32.mrf.mxu1 }
 0x367   : > { %v3291_v35 = vmax.f32 %v3289_v30, %v3290_v31  ;;  %v2912_v13 = vadd.f32 %v4140_v4, %v2815_v8 }
 0x368   : > { %v2905_v11 = vpop.f32.mrf.mxu1  ;;  %v4151_v12 = vpop.f32.mrf.mxu0 }
 0x369   : > { %v3292_v36 = vrot.slane %v3291_v35, 1  ;;  %v2906_v20 = vadd.f32 %v2905_v11, %v2805_v10  ;;  %v2999_v16 = vadd.f32 %v4151_v12, %v2912_v13 }
 0x36a   : > { %v2991_v14 = vpop.f32.mrf.mxu0 }
 0x36b   : > { %v3293_v39 = vmax.f32 %v3291_v35, %v3292_v36  ;;  %v2992_v22 = vadd.f32 %v2991_v14, %v2906_v20 }
 0x36d   : > { %v3294_v40 = vmax.f32 %v3286_v37, %v3293_v39 }
 0x36e   : > { %v4162_v15 = vpop.f32.mrf.mxu1 }
 0x36f   : > { %v3304_v43 = vrot.slane %v3294_v40, %v3303_v38  ;;  %3324 = vst.msk [vmem:[#allocation3] sm:$0x1] %vm3322_vm5, %v3294_v40  ;;  %v3296_v48 = vsub.f32 %v3286_v37, %v3294_v40  ;;  %v3084_v19 = vadd.f32 %v4162_v15, %v2999_v16 }
 0x371   : > { %v3306_v44 = vsub.f32 %v2706_v21, %v3304_v43  ;;  %v3307_v45 = vsub.f32 %v2712_v17, %v3304_v43  ;;  %v3297_v49 = vmul.f32 1.442695, %v3296_v48 }
 0x373   : > { %v3308_v46 = vmul.f32 1.442695, %v3306_v44  ;;  %v3310_v47 = vmul.f32 1.442695, %v3307_v45  ;;  %v4173_v18 = vpop.f32.mrf.mxu0 }
 0x374   : > { %v3173_v25 = vadd.f32 %v4173_v18, %v3084_v19 }
 0x375   : > { %4307 = vpow2.f32 %v3308_v46  ;;  %v3166_v23 = vpop.f32.mrf.mxu0 }
 0x376   : > { %4309 = vpow2.f32 %v3310_v47 }
 0x377   : > { %4311 = vpow2.f32 %v3297_v49 }
 0x382   : > { %v4308_v50 = vpop.eup %4307 }
 0x383   : > { %v4310_v51 = vpop.eup %4309  ;;  %v3312_v52 = vsel %vm2715_vm4, %v4308_v50, 0.0 }
 0x384   : > { %v3313_v41 = vsel %vm2715_vm4, %v4310_v51, 0.0  ;;  %v4312_v58 = vpop.eup %4311 }
 0x385   : > { %v3314_v53 = vadd.f32 %v3313_v41, %v3312_v52  ;;  %v3299_v61 = vmul.f32 %v4312_v58, %v3295_v59 }
 0x387   : > { %v3315_v54 = vrot.slane %v3314_v53, 4 }
 0x389   : > { %v3316_v55 = vadd.f32 %v3315_v54, %v3314_v53 }
 0x38b   : > { %v3317_v56 = vrot.slane %v3316_v55, 2 }
 0x38d   : > { %v3318_v57 = vadd.f32 %v3317_v56, %v3316_v55 }
 0x38f   : > { %v3319_v60 = vrot.slane %v3318_v57, 1 }
 0x391   : > { %v3320_v62 = vadd.f32 %v3319_v60, %v3318_v57 }
 0x393   : > { %v3321_v63 = vadd.f32 %v3320_v62, %v3299_v61 }
 0x395   : > { %3323 = vst.msk [vmem:[#allocation4] sm:$0x1] %vm3322_vm5, %v3321_v63 }
 0x3e8   : > { %v3262_v0 = vpop.xlane.xlu0 %3261 }
 0x3e9   : > { %v3266_v1 = vsub.f32 %v2706_v21, %v3262_v0 }
 0x3eb   : > { %v3268_v2 = vmul.f32 1.442695, %v3266_v1 }
 0x3ec   : > { %v3265_v3 = vpop.xlane.xlu0 %3264 }
 0x3ed   : > { %4313 = vpow2.f32 %v3268_v2  ;;  %v3267_v5 = vsub.f32 %v2712_v17, %v3265_v3  ;;  %v3075_v17 = vpop.f32.mrf.mxu1 }
 0x3ee   : > { %v3076_v21 = vadd.f32 %v3075_v17, %v2992_v22 }
 0x3ef   : > { %v3270_v6 = vmul.f32 1.442695, %v3267_v5  ;;  %v4184_v24 = vpop.f32.mrf.mxu1 }
 0x3f0   : > { %v3167_v27 = vadd.f32 %v3166_v23, %v3076_v21  ;;  %v3254_v30 = vadd.f32 %v4184_v24, %v3173_v25 }
 0x3f1   : > { %4315 = vpow2.f32 %v3270_v6  ;;  %v3247_v29 = vpop.f32.mrf.mxu1 }
 0x3f2   : > { %v3248_v31 = vadd.f32 %v3247_v29, %v3167_v27  ;;  %3259 = vst.msk [vmem:[%s4810_s9 + $0x8] sm:$0xff] %vm3257_vm6, %v3254_v30 }
 0x3f4   : > { %3258 = vst.msk [vmem:[%s4810_s9] sm:$0xff] %vm3257_vm6, %v3248_v31 }
 0x3fa   : > { %v4314_v26 = vpop.eup %4313 }
 0x3fb   : > { %v3272_v28 = vsel %vm2715_vm4, %v4314_v26, 0.0 }
 0x3fc   : > { %3273 = vadd.xlane.f32.xlu1 %v3272_v28 }
 0x3fe   : > { %v4316_v32 = vpop.eup %4315 }
 0x3ff   : > { %v3275_v34 = vsel %vm2715_vm4, %v4316_v32, 0.0 }
 0x400   : > { %3276 = vadd.xlane.f32.xlu1 %v3275_v34 }
 0x485   : > { %v3274_v33 = vpop.xlane.xlu1 %3273 }
 0x486   : > { %4317 = vlog2.f32 %v3274_v33 }
 0x489   : > { %v3277_v35 = vpop.xlane.xlu1 %3276 }
 0x48a   : > { %4319 = vlog2.f32 %v3277_v35 }
 0x493   : > { %v4318_v36 = vpop.eup %4317 }
 0x494   : > { %v3279_v37 = vmul.f32 0.6931472, %v4318_v36 }
 0x496   : > { %v3282_v38 = vadd.f32 %v3279_v37, %v3262_v0 }
 0x497   : > { %v4320_v39 = vpop.eup %4319 }
 0x498   : > { %v3281_v40 = vmul.f32 0.6931472, %v4320_v39  ;;  %3284 = vst.msk [vmem:[%s4815_s11] sm:$0xff] %vm3257_vm6, %v3282_v38  ;;  %3328 = sbr.rel (%p3670_p2) target bundleno = 1201 (0x4b1), region = 64 }
 0x49a   : > { %v3283_v43 = vadd.f32 %v3281_v40, %v3265_v3 }
 0x49c   : > { %3285 = vst.msk [vmem:[%s4815_s11 + $0x8] sm:$0xff] %vm3257_vm6, %v3283_v43 }
 0x49d   : > { %v3330_v44 = vld [vmem:[#allocation4] sm:$0x1]  ;;  %v3329_v46 = vld [vmem:[#allocation3] sm:$0x1] }
 0x49e   : > { %4321 = vlog2.f32 %v3330_v44 }
 0x4ab   : > { %v4322_v45 = vpop.eup %4321 }
 0x4ac   : > { %v3332_v47 = vmul.f32 0.6931472, %v4322_v45 }
 0x4ae   : > { %v3333_v48 = vadd.f32 %v3332_v47, %v3329_v46 }
 0x4b0   : > { %3334 = vst.msk [vmem:[%s510_s23] sm:$0x1] %vm3322_vm5, %v3333_v48 }
 0x4b1 PF: > { %s3671_s11 = sshll.u32 %s4521_s25, 4  ;;  %s5470_s9 = sld [smem:[#allocation33_spill]] }
 0x4b2   : > { %s3391_s29 = sshll.u32 %s504_s6, 4  ;;  %s3363_s15 = scalar_lea.sflag [#allocation8], %s4789_s10  ;;  %s3392_s29 = int_to_ptr.vmem [resolvable:$true] %s3391_s29 }
 0x4b3   : > { %s4379_s8 = scalar_lea.vmem %s3392_s29, 16  ;;  %s4543_s0 = smov [#allocation11]  }
 0x4b4   : > { %p4380_p6 = scmp.ne.s32.totalorder %s3392_s29, %s4379_s8  ;;  %s4383_s3 = sshll.u32 %s4543_s0, 4  ;;  %s4384_s3 = int_to_ptr.vmem [resolvable:$false] %s4383_s3 }
 0x4b5   : > { %s4385_s17 = scalar_lea.vmem %s4384_s3, 32  ;;  %p4386_p4 = scmp.lt.s32.totalorder %s3392_s29, %s4384_s3 }
 0x4b6   : > { %p4381_p9 = pnand %p4380_p6, %p4753_p12  ;;  %p4387_p8 = scmp.lt.s32.totalorder %s4385_s17, %s4379_s8 }
 0x4b7   : > { %s3389_s16 = scalar_lea.hbm %s5470_s9, %s3671_s11 }
 0x4b8   : > { %p4382_p1 = pneg %p4381_p9  ;;  %p4388_p3 = por %p4387_p8, %p4386_p4 }
 0x4ba   : > { %p4389_p5 = pnand %p4388_p3, %p4382_p1 }
 0x4bc   : > { %4392 = shalt.err (!%p4389_p5)
}
 0x4bd   : > { %s4393_s2 = scalar_lea.hbm %s3389_s16, 16  ;;  %s4397_s12 = scalar_lea.hbm %s5470_s9, 32 }
 0x4be   : > { %p4394_p11 = scmp.ne.s32.totalorder %s3389_s16, %s4393_s2  ;;  %p4398_p10 = scmp.lt.s32.totalorder %s3389_s16, %s5470_s9 }
 0x4bf   : > { %p4399_p2 = scmp.lt.s32.totalorder %s4397_s12, %s4393_s2 }
 0x4c0   : > { %p4395_p7 = pnand %p4394_p11, %p4753_p12 }
 0x4c1   : > { %p4400_p6 = por %p4399_p2, %p4398_p10 }
 0x4c2   : > { %p4396_p0 = pneg %p4395_p7 }
 0x4c4   : > { %p4401_p9 = pnand %p4400_p6, %p4396_p0 }
 0x4c6   : > { %4404 = shalt.err (!%p4401_p9)
}
 0x4c7   : > { %4192 = dma.vmem_to_hbm [thread:$0]  (%p4753_p12), %s3392_s29, 16, %s3389_s16, %s3363_s15  }
 0x4c8   : > { %s5471_s24 = sld [smem:[#allocation34_spill]]  ;;  %s3404_s0 = sshll.u32 %s510_s23, 4  ;;  %s3405_s0 = int_to_ptr.vmem [resolvable:$true] %s3404_s0 }
 0x4c9   : > { %s3367_s3 = scalar_lea.sflag [#allocation13], %s4789_s10  ;;  %s4405_s17 = scalar_lea.vmem %s3405_s0, 16 }
 0x4ca   : > { %p4406_p1 = scmp.ne.s32.totalorder %s3405_s0, %s4405_s17  ;;  %s4544_s2 = smov [#allocation12]  }
 0x4cb   : > { %s4409_s6 = sshll.u32 %s4544_s2, 4  ;;  %s4410_s6 = int_to_ptr.vmem [resolvable:$false] %s4409_s6 }
 0x4cc   : > { %p4407_p4 = pnand %p4406_p1, %p4753_p12  ;;  %s4411_s26 = scalar_lea.vmem %s4410_s6, 32 }
 0x4cd   : > { %p4412_p3 = scmp.lt.s32.totalorder %s3405_s0, %s4410_s6  ;;  %p4413_p5 = scmp.lt.s32.totalorder %s4411_s26, %s4405_s17 }
 0x4ce   : > { %s5472_s13 = smov %s5471_s24  ;;  %s3402_s8 = scalar_lea.hbm %s5471_s24, %s3671_s11 }
 0x4cf   : > { %p4408_p8 = pneg %p4407_p4  ;;  %p4414_p11 = por %p4413_p5, %p4412_p3 }
 0x4d1   : > { %p4415_p7 = pnand %p4414_p11, %p4408_p8 }
 0x4d3   : > { %4418 = shalt.err (!%p4415_p7)
}
 0x4d4   : > { %s4419_s25 = scalar_lea.hbm %s3402_s8, 16  ;;  %s4423_s11 = scalar_lea.hbm %s5472_s13, 32 }
 0x4d5   : > { %p4420_p0 = scmp.ne.s32.totalorder %s3402_s8, %s4419_s25  ;;  %p4424_p6 = scmp.lt.s32.totalorder %s3402_s8, %s5472_s13 }
 0x4d6   : > { %p4425_p9 = scmp.lt.s32.totalorder %s4423_s11, %s4419_s25 }
 0x4d7   : > { %p4421_p10 = pnand %p4420_p0, %p4753_p12 }
 0x4d8   : > { %p4426_p1 = por %p4425_p9, %p4424_p6 }
 0x4d9   : > { %p4422_p2 = pneg %p4421_p10 }
 0x4db   : > { %p4427_p4 = pnand %p4426_p1, %p4422_p2 }
 0x4dd   : > { %4430 = shalt.err (!%p4427_p4)
}
 0x4de   : > { %4193 = dma.vmem_to_hbm [thread:$0]  (%p4753_p12), %s3405_s0, 16, %s3402_s8, %s3367_s3  }
 0x4df PF: > { %p4211_p8 = scmp.ge.s32.totalorder %s4533_s28, 2  ;;  %s3452_s15 = sand.u32 1, %s4493_s19  }
 0x4e0   : > { %s3453_s12 = scalar_lea.sflag [#allocation8], %s3452_s15 }
 0x4e1   : > { %p4204_p3 = pnand %p4211_p8, %p4757_p13 }
 0x4e3   : > { %p4205_p5 = pneg %p4204_p3 }
 0x4e5   : > { %4484 = dma.done.wait (%p4205_p5), %s3453_s12, 16  }
 0x4e6   : > { %4486 = vsyncadd (%p4205_p5), %s3453_s12, 4294967280  ;;  %s3461_s22 = scalar_lea.sflag [#allocation13], %s3452_s15 }
 0x4e7   : > { %4488 = dma.done.wait (%p4205_p5), %s3461_s22, 16  }
 0x4e8   : > { %4490 = vsyncadd (%p4205_p5), %s3461_s22, 4294967280  ;;  %s36_s28 = sadd.s32 1, %s4533_s28   ;;  %s5473_s22 = sld [smem:[#allocation18_spill]] }
 0x4e9   : > { %p33_p11 = scmp.ge.s32.totalorder %s36_s28, 6   ;;  %s5474_s23 = sld [smem:[#allocation19_spill]] }
 0x4ea   : > { %s5475_s6 = sld [smem:[#allocation24_spill]]  ;;  %s5480_s19 = smov %s4497_s20 }
 0x4eb   : > { %s5476_s24 = sld [smem:[#allocation20_spill]]  ;;  %s5481_s20 = smov %s4501_s21 }
 0x4ec   : > { %s5477_s25 = sld [smem:[#allocation21_spill]]  ;;  %s5482_s21 = smov %s4738_s30 }
 0x4ed   : > { %s5478_s26 = sld [smem:[#allocation22_spill]]  ;;  %35 = sbr.rel (!%p33_p11) target bundleno = 24 (0x18), region = 167 }
 0x4ee   : > { %s5479_s27 = sld [smem:[#allocation23_spill]] }
 0x4f2   :  { %3465 = vsyncpa [#allocation7], 1 }
 0x4f3   :  { %3467 = vsyncpa [#allocation7 + $0x1], 1 }
 0x4f4   :  { %3468 = vsyncpa [#allocation10], 1 }
 0x4f5   :  { %3470 = vsyncpa [#allocation10 + $0x1], 1 }
 0x4f6   :  { %3471 = vsyncpa [#allocation8], 1 }
 0x4f7   :  { %3473 = vsyncpa [#allocation8 + $0x1], 1 }
 0x4f8   :  { %3474 = vsyncpa [#allocation13], 1 }
 0x4f9   :  { %3476 = vsyncpa [#allocation13 + $0x1], 1 }

</bundles_post_ra>
